<compile_context>
chip_gen: v6e
topology: v6e:2x2x1
jax: 0.10.0
libtpu: 0.0.40
codegen_flags: <defaults>
</compile_context>

<pallas_src>
import functools

import jax
import jax.numpy as jnp
from jax import lax
from jax.experimental import pallas as pl
from jax.experimental.pallas import tpu as pltpu


# ------------------------------ helpers --------------------------------------

def _row_tile(M, max_rows=512):
    """Largest row tile <= max_rows that divides M and is a multiple of 8
    (falls back to the full M for small/indivisible row counts)."""
    if M <= max_rows:
        return M
    t = max_rows - (max_rows % 8)
    while t >= 8:
        if M % t == 0:
            return t
        t -= 8
    return M


_PARALLEL_1D = pltpu.CompilerParams(dimension_semantics=("parallel",))


# ------------------------------ kernels --------------------------------------

def _embed_kernel(x_ref, w_ref, b_ref, o_ref):
    y = jnp.dot(x_ref[...], w_ref[...], preferred_element_type=jnp.float32)
    o_ref[...] = (y + b_ref[...]).astype(o_ref.dtype)


def _ln_matmul_kernel(x_ref, g_ref, b_ref, w_ref, wb_ref, o_ref, *, eps, activation):
    """LayerNorm (fp32) -> matmul (bf16/fp32 weights, fp32 acc) [-> log_softmax]."""
    x = x_ref[...].astype(jnp.float32)
    mu = jnp.mean(x, axis=-1, keepdims=True)
    xc = x - mu
    var = jnp.mean(xc * xc, axis=-1, keepdims=True)
    h = xc * lax.rsqrt(var + eps) * g_ref[...] + b_ref[...]
    y = jnp.dot(h.astype(w_ref.dtype), w_ref[...],
                preferred_element_type=jnp.float32) + wb_ref[...]
    if activation == "log_softmax":
        m = jnp.max(y, axis=-1, keepdims=True)
        z = y - m
        y = z - jnp.log(jnp.sum(jnp.exp(z), axis=-1, keepdims=True))
    o_ref[...] = y.astype(o_ref.dtype)


def _ln_ffn_kernel(x_ref, g_ref, b_ref, w1_ref, b1_ref, w2_ref, b2_ref, o_ref, *, eps):
    """LN2 -> W1 -> ReLU -> W2 -> +residual, all in one VMEM-resident pass."""
    x = x_ref[...].astype(jnp.float32)
    mu = jnp.mean(x, axis=-1, keepdims=True)
    xc = x - mu
    var = jnp.mean(xc * xc, axis=-1, keepdims=True)
    h = xc * lax.rsqrt(var + eps) * g_ref[...] + b_ref[...]
    f = jnp.dot(h.astype(w1_ref.dtype), w1_ref[...],
                preferred_element_type=jnp.float32) + b1_ref[...]
    f = jnp.maximum(f, 0.0)
    y = jnp.dot(f.astype(w2_ref.dtype), w2_ref[...],
                preferred_element_type=jnp.float32) + b2_ref[...]
    o_ref[...] = (x + y).astype(o_ref.dtype)          # fused residual add


def _attn_kernel(q_ref, k_ref, v_ref, dist_ref, mpen_ref, dw_ref,
                 wo_ref, bo_ref, xres_ref, o_ref, *, scale):
    """All heads of one batch element: scores + in-kernel multi-relation bias
    + softmax + PV + per-head Wo projection + bias + residual."""
    q = q_ref[0]                               # (H, S, dk) bf16
    k = k_ref[0]
    v = v_ref[0]
    # scores, batched over heads, contracting dk (no explicit k transpose)
    s = lax.dot_general(q, k, (((2,), (2,)), ((0,), (0,))),
                        preferred_element_type=jnp.float32)          # (H, S, S)
    # multi-relation bias computed on the VPU: per-head dist scale + mask penalty
    s = s * scale + dw_ref[...] * dist_ref[0][None, :, :] \
        + mpen_ref[0, 0][None, None, :]
    m = jnp.max(s, axis=-1, keepdims=True)
    p = jnp.exp(s - m)
    p = p * pl.reciprocal(jnp.sum(p, axis=-1, keepdims=True), approx=True)
    attn = lax.dot_general(p.astype(v.dtype), v, (((2,), (1,)), ((0,), (0,))),
                           preferred_element_type=jnp.float32)       # (H, S, dk)
    # output projection: concat(heads) @ Wo  ==  sum_h attn_h @ Wo_h
    o_h = lax.dot_general(attn.astype(wo_ref.dtype), wo_ref[...],
                          (((2,), (1,)), ((0,), (0,))),
                          preferred_element_type=jnp.float32)        # (H, S, D)
    o = jnp.sum(o_h, axis=0) + bo_ref[...]                           # (S, D)
    o_ref[0] = (xres_ref[0] + o).astype(o_ref.dtype)                 # fused residual


# ------------------------------ wrappers --------------------------------------

def embed_linear(x, w, b):
    M, K = x.shape
    N = w.shape[1]
    tm = _row_tile(M)
    return pl.pallas_call(
        _embed_kernel,
        out_shape=jax.ShapeDtypeStruct((M, N), jnp.float32),
        grid=(M // tm,),
        in_specs=[pl.BlockSpec((tm, K), lambda i: (i, 0)),
                  pl.BlockSpec((K, N), lambda i: (0, 0)),
                  pl.BlockSpec((1, N), lambda i: (0, 0))],
        out_specs=pl.BlockSpec((tm, N), lambda i: (i, 0)),
        compiler_params=_PARALLEL_1D,
    )(x, w, b.reshape(1, N))


def ln_matmul(x, g, b, w, wb, out_dtype=jnp.float32, activation=None, eps=1e-5):
    M, D = x.shape
    N = w.shape[1]
    tm = _row_tile(M)
    return pl.pallas_call(
        functools.partial(_ln_matmul_kernel, eps=eps, activation=activation),
        out_shape=jax.ShapeDtypeStruct((M, N), out_dtype),
        grid=(M // tm,),
        in_specs=[pl.BlockSpec((tm, D), lambda i: (i, 0)),
                  pl.BlockSpec((1, D), lambda i: (0, 0)),
                  pl.BlockSpec((1, D), lambda i: (0, 0)),
                  pl.BlockSpec((D, N), lambda i: (0, 0)),
                  pl.BlockSpec((1, N), lambda i: (0, 0))],
        out_specs=pl.BlockSpec((tm, N), lambda i: (i, 0)),
        compiler_params=_PARALLEL_1D,
    )(x, g.reshape(1, D), b.reshape(1, D), w, wb.reshape(1, N))


def ln_ffn(x, g, b, w1, b1, w2, b2, eps=1e-5):
    M, D = x.shape
    F = w1.shape[1]
    tm = _row_tile(M)
    return pl.pallas_call(
        functools.partial(_ln_ffn_kernel, eps=eps),
        out_shape=jax.ShapeDtypeStruct((M, D), jnp.float32),
        grid=(M // tm,),
        in_specs=[pl.BlockSpec((tm, D), lambda i: (i, 0)),
                  pl.BlockSpec((1, D), lambda i: (0, 0)),
                  pl.BlockSpec((1, D), lambda i: (0, 0)),
                  pl.BlockSpec((D, F), lambda i: (0, 0)),
                  pl.BlockSpec((1, F), lambda i: (0, 0)),
                  pl.BlockSpec((F, D), lambda i: (0, 0)),
                  pl.BlockSpec((1, D), lambda i: (0, 0))],
        out_specs=pl.BlockSpec((tm, D), lambda i: (i, 0)),
        compiler_params=_PARALLEL_1D,
    )(x, g.reshape(1, D), b.reshape(1, D), w1, b1.reshape(1, F), w2, b2.reshape(1, D))


def attention_block(q, k, v, dist, mask_pen, dist_w_h, wo_h, bo, x_res, scale):
    """q,k,v: (B,H,S,dk) bf16; dist: (B,S,S); mask_pen: (B,1,S); wo_h: (H,dk,D)."""
    B, H, S, dk = q.shape
    D = wo_h.shape[2]
    return pl.pallas_call(
        functools.partial(_attn_kernel, scale=scale),
        out_shape=jax.ShapeDtypeStruct((B, S, D), jnp.float32),
        grid=(B,),
        in_specs=[pl.BlockSpec((1, H, S, dk), lambda b: (b, 0, 0, 0)),
                  pl.BlockSpec((1, H, S, dk), lambda b: (b, 0, 0, 0)),
                  pl.BlockSpec((1, H, S, dk), lambda b: (b, 0, 0, 0)),
                  pl.BlockSpec((1, S, S), lambda b: (b, 0, 0)),
                  pl.BlockSpec((1, 1, S), lambda b: (b, 0, 0)),
                  pl.BlockSpec((H, 1, 1), lambda b: (0, 0, 0)),
                  pl.BlockSpec((H, dk, D), lambda b: (0, 0, 0)),
                  pl.BlockSpec((1, D), lambda b: (0, 0)),
                  pl.BlockSpec((1, S, D), lambda b: (b, 0, 0))],
        out_specs=pl.BlockSpec((1, S, D), lambda b: (b, 0, 0)),
        compiler_params=_PARALLEL_1D,
    )(q, k, v, dist, mask_pen, dist_w_h, wo_h, bo.reshape(1, D), x_res)


# --------------------------- model definition ---------------------------------

def init_params(key, f_in, d_model, n_heads, d_ff, n_layers, n_out):
    dk = d_model // n_heads

    def dense(k, shape, dtype=jnp.bfloat16, scale=0.02):
        return (scale * jax.random.normal(k, shape, jnp.float32)).astype(dtype)

    keys = jax.random.split(key, 2 + 4 * n_layers)
    ki = iter(keys)
    params = {
        # embed / generator matmuls are tiny (K=f_in, N=n_out) -> keep fp32
        "We": dense(next(ki), (f_in, d_model), jnp.float32),
        "be": jnp.zeros((d_model,), jnp.float32),
        "lnf_g": jnp.ones((d_model,), jnp.float32),
        "lnf_b": jnp.zeros((d_model,), jnp.float32),
        "Wg": dense(next(ki), (d_model, n_out), jnp.float32),
        "bg": jnp.zeros((n_out,), jnp.float32),
        "layers": [],
    }
    for _ in range(n_layers):
        lp = {
            "ln1_g": jnp.ones((d_model,), jnp.float32),
            "ln1_b": jnp.zeros((d_model,), jnp.float32),
            # fused QKV projection (bf16 weights, fp32 biases)
            "Wqkv": dense(next(ki), (d_model, 3 * d_model)),
            "bqkv": jnp.zeros((3 * d_model,), jnp.float32),
            # output projection stored per-head: (H, dk, D)
            "Wo_h": dense(next(ki), (n_heads, dk, d_model)),
            "bo": jnp.zeros((d_model,), jnp.float32),
            # per-head learned scale on the distance matrix ("multi-relation")
            "dist_w": 0.1 * jnp.ones((n_heads,), jnp.float32),
            "ln2_g": jnp.ones((d_model,), jnp.float32),
            "ln2_b": jnp.zeros((d_model,), jnp.float32),
            "W1": dense(next(ki), (d_model, d_ff)),
            "b1": jnp.zeros((d_ff,), jnp.float32),
            "W2": dense(next(ki), (d_ff, d_model)),
            "b2": jnp.zeros((d_model,), jnp.float32),
        }
        params["layers"].append(lp)
    return params


def multi_relation_transformer_3d(params, src, src_mask, dist):
    """forward: generator(encoder(src_embed(src), dist, src_mask))"""
    B, S, f_in = src.shape
    D = params["We"].shape[1]
    H = params["layers"][0]["dist_w"].shape[0]
    dk = D // H
    scale = 1.0 / (dk ** 0.5)

    # ---- src_embed ----
    x = embed_linear(src.reshape(B * S, f_in), params["We"], params["be"])
    x = x.reshape(B, S, D)

    # key-padding penalty (tiny (B,1,S) array; per-head bias built inside kernel)
    mask_pen = jnp.where(src_mask > 0, 0.0, -1e9).astype(jnp.float32).reshape(B, 1, S)

    # ---- encoder (pre-norm layers; dropout = identity at eval) ----
    for lp in params["layers"]:
        # (a) LN1 + fused QKV projection (bf16 activations out)
        qkv = ln_matmul(x.reshape(B * S, D), lp["ln1_g"], lp["ln1_b"],
                        lp["Wqkv"], lp["bqkv"], out_dtype=jnp.bfloat16)
        qkv = qkv.reshape(B, S, 3, H, dk)
        q = qkv[:, :, 0].transpose(0, 2, 1, 3)   # (B, H, S, dk)
        k = qkv[:, :, 1].transpose(0, 2, 1, 3)
        v = qkv[:, :, 2].transpose(0, 2, 1, 3)

        # (b) attention (+ in-kernel dist/mask bias) + Wo + residual
        x = attention_block(q, k, v, dist, mask_pen,
                            lp["dist_w"].reshape(H, 1, 1),
                            lp["Wo_h"], lp["bo"], x, scale)

        # (c) LN2 + feed-forward + residual (d_ff intermediate stays in VMEM)
        x = ln_ffn(x.reshape(B * S, D), lp["ln2_g"], lp["ln2_b"],
                   lp["W1"], lp["b1"], lp["W2"], lp["b2"]).reshape(B, S, D)

    # ---- final LayerNorm + generator (Linear + log_softmax), fused ----
    n_out = params["Wg"].shape[1]
    out = ln_matmul(x.reshape(B * S, D), params["lnf_g"], params["lnf_b"],
                    params["Wg"], params["bg"], out_dtype=jnp.float32,
                    activation="log_softmax")
    return out.reshape(B, S, n_out)


# --------------------------------- main ---------------------------------------

if __name__ == "__main__":
    B, S, F_IN = 2, 8, 4
    D_MODEL, N_HEADS, D_FF, N_LAYERS, N_OUT = 32, 4, 64, 2, 2

    key = jax.random.PRNGKey(0)
    k_src, k_dist = jax.random.split(key, 2)

    src = jax.random.normal(k_src, (B, S, F_IN), jnp.float32)
    # symmetric non-negative pairwise "distance" matrix
    pts = jax.random.normal(k_dist, (B, S, 3), jnp.float32)
    dist = jnp.sqrt(jnp.sum((pts[:, :, None, :] - pts[:, None, :, :]) ** 2, axis=-1) + 1e-8)
    # mask out the last two tokens of batch element 1
    src_mask = jnp.ones((B, S), jnp.float32).at[1, S - 2:].set(0.0)

    params = init_params(jax.random.PRNGKey(1), F_IN, D_MODEL, N_HEADS, D_FF,
                         N_LAYERS, N_OUT)

    fwd = jax.jit(multi_relation_transformer_3d)
    out = jax.block_until_ready(fwd(params, src, src_mask, dist))

    assert out.shape == (B, S, N_OUT)
    assert bool(jnp.all(jnp.isfinite(out)))
    # rows of log_softmax must sum (in prob space) to 1
    assert bool(jnp.allclose(jnp.sum(jnp.exp(out), axis=-1), 1.0, atol=1e-4))
    print("KERNEL_OK")
</pallas_src>

<mosaic_0001>
module attributes {stable_mosaic.version = 11 : i64} {
  func.func @_embed_kernel(%arg0: i32, %arg1: memref<16x4xf32, #tpu.memory_space<vmem>>, %arg2: memref<4x32xf32, #tpu.memory_space<vmem>>, %arg3: memref<1x32xf32, #tpu.memory_space<vmem>>, %arg4: memref<16x32xf32, #tpu.memory_space<vmem>>) attributes {dimension_semantics = [#tpu.dimension_semantics<parallel>], iteration_bounds = array<i64: 1>, scalar_prefetch = 0 : i64, scratch_operands = 0 : i64, tpu.core_type = #tpu.core_type<tc>, window_params = [{transform_indices = @transform_0, window_bounds = array<i64: 16, 4>}, {pipeline_mode = #tpu.pipeline_mode<synchronous>, transform_indices = @transform_1, window_bounds = array<i64: 4, 32>}, {pipeline_mode = #tpu.pipeline_mode<synchronous>, transform_indices = @transform_2, window_bounds = array<i64: 1, 32>}, {transform_indices = @transform_3, window_bounds = array<i64: 16, 32>}]} {
    %c0 = arith.constant 0 : index
    %c0_0 = arith.constant 0 : index
    %0 = vector.load %arg1[%c0, %c0_0] : memref<16x4xf32, #tpu.memory_space<vmem>>, vector<16x4xf32>
    %c0_1 = arith.constant 0 : index
    %c0_2 = arith.constant 0 : index
    %1 = vector.load %arg2[%c0_1, %c0_2] : memref<4x32xf32, #tpu.memory_space<vmem>>, vector<4x32xf32>
    %cst = arith.constant dense<0.000000e+00> : vector<16x32xf32>
    %2 = tpu.matmul %0, %1, %cst {dimension_numbers = #tpu.dot_dimension_numbers<[1], [0], [0], [1], [0, 0, 1, 1], [], []>} : vector<16x4xf32>, vector<4x32xf32>, vector<16x32xf32> -> vector<16x32xf32>
    %c0_3 = arith.constant 0 : index
    %c0_4 = arith.constant 0 : index
    %3 = vector.load %arg3[%c0_3, %c0_4] : memref<1x32xf32, #tpu.memory_space<vmem>>, vector<1x32xf32>
    %4 = vector.broadcast %3 : vector<1x32xf32> to vector<16x32xf32>
    %5 = arith.addf %2, %4 : vector<16x32xf32>
    %c0_5 = arith.constant 0 : index
    %c0_6 = arith.constant 0 : index
    %6 = vector.load %arg4[%c0_5, %c0_6] : memref<16x32xf32, #tpu.memory_space<vmem>>, vector<16x32xf32>
    tpu.vector_store %arg4[%c0_5, %c0_6], %5 {strides = array<i32>} : memref<16x32xf32, #tpu.memory_space<vmem>>, vector<16x32xf32>,
    return
  }
  func.func @transform_0(%arg0: i32) -> (i32, i32) {
    %c0_i32 = arith.constant 0 : i32
    %c0_i32_0 = arith.constant 0 : i32
    return %arg0, %c0_i32 : i32, i32
  }
  func.func @transform_1(%arg0: i32) -> (i32, i32) {
    %c0_i32 = arith.constant 0 : i32
    %c0_i32_0 = arith.constant 0 : i32
    %c0_i32_1 = arith.constant 0 : i32
    return %c0_i32, %c0_i32_0 : i32, i32
  }
  func.func @transform_2(%arg0: i32) -> (i32, i32) {
    %c0_i32 = arith.constant 0 : i32
    %c0_i32_0 = arith.constant 0 : i32
    %c0_i32_1 = arith.constant 0 : i32
    return %c0_i32, %c0_i32_0 : i32, i32
  }
  func.func @transform_3(%arg0: i32) -> (i32, i32) {
    %c0_i32 = arith.constant 0 : i32
    %c0_i32_0 = arith.constant 0 : i32
    return %arg0, %c0_i32 : i32, i32
  }
}

module attributes {stable_mosaic.version = 11 : i64} {
  func.func @_ln_matmul_kernel(%arg0: i32, %arg1: memref<16x32xf32, #tpu.memory_space<vmem>>, %arg2: memref<1x32xf32, #tpu.memory_space<vmem>>, %arg3: memref<1x32xf32, #tpu.memory_space<vmem>>, %arg4: memref<32x96xbf16, #tpu.memory_space<vmem>>, %arg5: memref<1x96xf32, #tpu.memory_space<vmem>>, %arg6: memref<16x96xbf16, #tpu.memory_space<vmem>>) attributes {dimension_semantics = [#tpu.dimension_semantics<parallel>], iteration_bounds = array<i64: 1>, scalar_prefetch = 0 : i64, scratch_operands = 0 : i64, tpu.core_type = #tpu.core_type<tc>, window_params = [{transform_indices = @transform_0, window_bounds = array<i64: 16, 32>}, {pipeline_mode = #tpu.pipeline_mode<synchronous>, transform_indices = @transform_1, window_bounds = array<i64: 1, 32>}, {pipeline_mode = #tpu.pipeline_mode<synchronous>, transform_indices = @transform_2, window_bounds = array<i64: 1, 32>}, {pipeline_mode = #tpu.pipeline_mode<synchronous>, transform_indices = @transform_3, window_bounds = array<i64: 32, 96>}, {pipeline_mode = #tpu.pipeline_mode<synchronous>, transform_indices = @transform_4, window_bounds = array<i64: 1, 96>}, {transform_indices = @transform_5, window_bounds = array<i64: 16, 96>}]} {
    %c0 = arith.constant 0 : index
    %c0_0 = arith.constant 0 : index
    %0 = vector.load %arg1[%c0, %c0_0] : memref<16x32xf32, #tpu.memory_space<vmem>>, vector<16x32xf32>
    %cst = arith.constant dense<0.000000e+00> : vector<16xf32>
    %1 = vector.multi_reduction <add>, %0, %cst [1] : vector<16x32xf32> to vector<16xf32>
    %2 = vector.shape_cast %1 : vector<16xf32> to vector<16x1xf32>
    %cst_1 = arith.constant 3.200000e+01 : f32
    %3 = vector.broadcast %cst_1 : f32 to vector<16x1xf32>
    %4 = arith.divf %2, %3 : vector<16x1xf32>
    %5 = vector.broadcast %4 : vector<16x1xf32> to vector<16x32xf32>
    %6 = arith.subf %0, %5 : vector<16x32xf32>
    %7 = arith.mulf %6, %6 : vector<16x32xf32>
    %cst_2 = arith.constant dense<0.000000e+00> : vector<16xf32>
    %8 = vector.multi_reduction <add>, %7, %cst_2 [1] : vector<16x32xf32> to vector<16xf32>
    %9 = vector.shape_cast %8 : vector<16xf32> to vector<16x1xf32>
    %cst_3 = arith.constant 3.200000e+01 : f32
    %10 = vector.broadcast %cst_3 : f32 to vector<16x1xf32>
    %11 = arith.divf %9, %10 : vector<16x1xf32>
    %cst_4 = arith.constant 9.99999974E-6 : f32
    %12 = vector.broadcast %cst_4 : f32 to vector<16x1xf32>
    %13 = arith.addf %11, %12 : vector<16x1xf32>
    %14 = math.rsqrt %13 : vector<16x1xf32>
    %15 = vector.broadcast %14 : vector<16x1xf32> to vector<16x32xf32>
    %16 = arith.mulf %6, %15 : vector<16x32xf32>
    %c0_5 = arith.constant 0 : index
    %c0_6 = arith.constant 0 : index
    %17 = vector.load %arg2[%c0_5, %c0_6] : memref<1x32xf32, #tpu.memory_space<vmem>>, vector<1x32xf32>
    %18 = vector.broadcast %17 : vector<1x32xf32> to vector<16x32xf32>
    %19 = arith.mulf %16, %18 : vector<16x32xf32>
    %c0_7 = arith.constant 0 : index
    %c0_8 = arith.constant 0 : index
    %20 = vector.load %arg3[%c0_7, %c0_8] : memref<1x32xf32, #tpu.memory_space<vmem>>, vector<1x32xf32>
    %21 = vector.broadcast %20 : vector<1x32xf32> to vector<16x32xf32>
    %22 = arith.addf %19, %21 : vector<16x32xf32>
    %23 = arith.truncf %22 : vector<16x32xf32> to vector<16x32xbf16>
    %c0_9 = arith.constant 0 : index
    %c0_10 = arith.constant 0 : index
    %24 = vector.load %arg4[%c0_9, %c0_10] : memref<32x96xbf16, #tpu.memory_space<vmem>>, vector<32x96xbf16>
    %cst_11 = arith.constant dense<0.000000e+00> : vector<16x96xf32>
    %25 = tpu.matmul %23, %24, %cst_11 {dimension_numbers = #tpu.dot_dimension_numbers<[1], [0], [0], [1], [0, 0, 1, 1], [], []>} : vector<16x32xbf16>, vector<32x96xbf16>, vector<16x96xf32> -> vector<16x96xf32>
    %c0_12 = arith.constant 0 : index
    %c0_13 = arith.constant 0 : index
    %26 = vector.load %arg5[%c0_12, %c0_13] : memref<1x96xf32, #tpu.memory_space<vmem>>, vector<1x96xf32>
    %27 = vector.broadcast %26 : vector<1x96xf32> to vector<16x96xf32>
    %28 = arith.addf %25, %27 : vector<16x96xf32>
    %29 = arith.truncf %28 : vector<16x96xf32> to vector<16x96xbf16>
    %c0_14 = arith.constant 0 : index
    %c0_15 = arith.constant 0 : index
    %30 = vector.load %arg6[%c0_14, %c0_15] : memref<16x96xbf16, #tpu.memory_space<vmem>>, vector<16x96xbf16>
    tpu.vector_store %arg6[%c0_14, %c0_15], %29 {strides = array<i32>} : memref<16x96xbf16, #tpu.memory_space<vmem>>, vector<16x96xbf16>,
    return
  }
  func.func @transform_0(%arg0: i32) -> (i32, i32) {
    %c0_i32 = arith.constant 0 : i32
    %c0_i32_0 = arith.constant 0 : i32
    return %arg0, %c0_i32 : i32, i32
  }
  func.func @transform_1(%arg0: i32) -> (i32, i32) {
    %c0_i32 = arith.constant 0 : i32
    %c0_i32_0 = arith.constant 0 : i32
    %c0_i32_1 = arith.constant 0 : i32
    return %c0_i32, %c0_i32_0 : i32, i32
  }
  func.func @transform_2(%arg0: i32) -> (i32, i32) {
    %c0_i32 = arith.constant 0 : i32
    %c0_i32_0 = arith.constant 0 : i32
    %c0_i32_1 = arith.constant 0 : i32
    return %c0_i32, %c0_i32_0 : i32, i32
  }
  func.func @transform_3(%arg0: i32) -> (i32, i32) {
    %c0_i32 = arith.constant 0 : i32
    %c0_i32_0 = arith.constant 0 : i32
    %c0_i32_1 = arith.constant 0 : i32
    return %c0_i32, %c0_i32_0 : i32, i32
  }
  func.func @transform_4(%arg0: i32) -> (i32, i32) {
    %c0_i32 = arith.constant 0 : i32
    %c0_i32_0 = arith.constant 0 : i32
    %c0_i32_1 = arith.constant 0 : i32
    return %c0_i32, %c0_i32_0 : i32, i32
  }
  func.func @transform_5(%arg0: i32) -> (i32, i32) {
    %c0_i32 = arith.constant 0 : i32
    %c0_i32_0 = arith.constant 0 : i32
    return %arg0, %c0_i32 : i32, i32
  }
}

module attributes {stable_mosaic.version = 11 : i64} {
  func.func @_attn_kernel(%arg0: i32, %arg1: memref<1x4x8x8xbf16, #tpu.memory_space<vmem>>, %arg2: memref<1x4x8x8xbf16, #tpu.memory_space<vmem>>, %arg3: memref<1x4x8x8xbf16, #tpu.memory_space<vmem>>, %arg4: memref<1x8x8xf32, #tpu.memory_space<vmem>>, %arg5: memref<1x1x8xf32, #tpu.memory_space<vmem>>, %arg6: memref<4x1x1xf32, #tpu.memory_space<vmem>>, %arg7: memref<4x8x32xbf16, #tpu.memory_space<vmem>>, %arg8: memref<1x32xf32, #tpu.memory_space<vmem>>, %arg9: memref<1x8x32xf32, #tpu.memory_space<vmem>>, %arg10: memref<1x8x32xf32, #tpu.memory_space<vmem>>) attributes {dimension_semantics = [#tpu.dimension_semantics<parallel>], iteration_bounds = array<i64: 2>, scalar_prefetch = 0 : i64, scratch_operands = 0 : i64, tpu.core_type = #tpu.core_type<tc>, window_params = [{transform_indices = @transform_0, window_bounds = array<i64: 1, 4, 8, 8>}, {transform_indices = @transform_1, window_bounds = array<i64: 1, 4, 8, 8>}, {transform_indices = @transform_2, window_bounds = array<i64: 1, 4, 8, 8>}, {transform_indices = @transform_3, window_bounds = array<i64: 1, 8, 8>}, {transform_indices = @transform_4, window_bounds = array<i64: 1, 1, 8>}, {pipeline_mode = #tpu.pipeline_mode<synchronous>, transform_indices = @transform_5, window_bounds = array<i64: 4, 1, 1>}, {pipeline_mode = #tpu.pipeline_mode<synchronous>, transform_indices = @transform_6, window_bounds = array<i64: 4, 8, 32>}, {pipeline_mode = #tpu.pipeline_mode<synchronous>, transform_indices = @transform_7, window_bounds = array<i64: 1, 32>}, {transform_indices = @transform_8, window_bounds = array<i64: 1, 8, 32>}, {transform_indices = @transform_9, window_bounds = array<i64: 1, 8, 32>}]} {
    %c0 = arith.constant 0 : index
    %c0_0 = arith.constant 0 : index
    %c0_1 = arith.constant 0 : index
    %c0_2 = arith.constant 0 : index
    %0 = vector.load %arg1[%c0, %c0_0, %c0_1, %c0_2] : memref<1x4x8x8xbf16, #tpu.memory_space<vmem>>, vector<1x4x8x8xbf16>
    %1 = vector.shape_cast %0 : vector<1x4x8x8xbf16> to vector<4x8x8xbf16>
    %c0_3 = arith.constant 0 : index
    %c0_4 = arith.constant 0 : index
    %c0_5 = arith.constant 0 : index
    %c0_6 = arith.constant 0 : index
    %2 = vector.load %arg2[%c0_3, %c0_4, %c0_5, %c0_6] : memref<1x4x8x8xbf16, #tpu.memory_space<vmem>>, vector<1x4x8x8xbf16>
    %3 = vector.shape_cast %2 : vector<1x4x8x8xbf16> to vector<4x8x8xbf16>
    %c0_7 = arith.constant 0 : index
    %c0_8 = arith.constant 0 : index
    %c0_9 = arith.constant 0 : index
    %c0_10 = arith.constant 0 : index
    %4 = vector.load %arg3[%c0_7, %c0_8, %c0_9, %c0_10] : memref<1x4x8x8xbf16, #tpu.memory_space<vmem>>, vector<1x4x8x8xbf16>
    %5 = vector.shape_cast %4 : vector<1x4x8x8xbf16> to vector<4x8x8xbf16>
    %cst = arith.constant dense<0.000000e+00> : vector<4x8x8xf32>
    %6 = tpu.matmul %1, %3, %cst {dimension_numbers = #tpu.dot_dimension_numbers<[2], [2], [1], [1], [0, 0, 0, 1, 1, 1], [0], [0]>} : vector<4x8x8xbf16>, vector<4x8x8xbf16>, vector<4x8x8xf32> -> vector<4x8x8xf32>
    %cst_11 = arith.constant 0.353553385 : f32
    %7 = vector.broadcast %cst_11 : f32 to vector<4x8x8xf32>
    %8 = arith.mulf %6, %7 : vector<4x8x8xf32>
    %c0_12 = arith.constant 0 : index
    %c0_13 = arith.constant 0 : index
    %c0_14 = arith.constant 0 : index
    %9 = vector.load %arg6[%c0_12, %c0_13, %c0_14] : memref<4x1x1xf32, #tpu.memory_space<vmem>>, vector<4x1x1xf32>
    %c0_15 = arith.constant 0 : index
    %c0_16 = arith.constant 0 : index
    %c0_17 = arith.constant 0 : index
    %10 = vector.load %arg4[%c0_15, %c0_16, %c0_17] : memref<1x8x8xf32, #tpu.memory_space<vmem>>, vector<1x8x8xf32>
    %11 = vector.shape_cast %10 : vector<1x8x8xf32> to vector<8x8xf32>
    %12 = vector.shape_cast %11 : vector<8x8xf32> to vector<1x8x8xf32>
    %13 = vector.broadcast %9 : vector<4x1x1xf32> to vector<4x8x8xf32>
    %14 = vector.broadcast %12 : vector<1x8x8xf32> to vector<4x8x8xf32>
    %15 = arith.mulf %13, %14 : vector<4x8x8xf32>
    %16 = arith.addf %8, %15 : vector<4x8x8xf32>
    %c0_18 = arith.constant 0 : index
    %c0_19 = arith.constant 0 : index
    %c0_20 = arith.constant 0 : index
    %17 = vector.load %arg5[%c0_18, %c0_19, %c0_20] : memref<1x1x8xf32, #tpu.memory_space<vmem>>, vector<1x1x8xf32>
    %18 = vector.shape_cast %17 : vector<1x1x8xf32> to vector<8xf32>
    %19 = vector.shape_cast %18 : vector<8xf32> to vector<1x1x8xf32>
    %20 = vector.broadcast %19 : vector<1x1x8xf32> to vector<4x8x8xf32>
    %21 = arith.addf %16, %20 : vector<4x8x8xf32>
    %cst_21 = arith.constant dense<0xFF800000> : vector<4x8xf32>
    %22 = vector.multi_reduction <maximumf>, %21, %cst_21 [2] : vector<4x8x8xf32> to vector<4x8xf32>
    %23 = vector.shape_cast %22 : vector<4x8xf32> to vector<4x8x1xf32>
    %24 = vector.broadcast %23 : vector<4x8x1xf32> to vector<4x8x8xf32>
    %25 = arith.subf %21, %24 : vector<4x8x8xf32>
    %26 = math.exp %25 : vector<4x8x8xf32>
    %cst_22 = arith.constant dense<0.000000e+00> : vector<4x8xf32>
    %27 = vector.multi_reduction <add>, %26, %cst_22 [2] : vector<4x8x8xf32> to vector<4x8xf32>
    %28 = vector.shape_cast %27 : vector<4x8xf32> to vector<4x8x1xf32>
    %29 = tpu.reciprocal %28 {approx = true} : vector<4x8x1xf32> -> vector<4x8x1xf32>
    %30 = vector.broadcast %29 : vector<4x8x1xf32> to vector<4x8x8xf32>
    %31 = arith.mulf %26, %30 : vector<4x8x8xf32>
    %32 = arith.truncf %31 : vector<4x8x8xf32> to vector<4x8x8xbf16>
    %cst_23 = arith.constant dense<0.000000e+00> : vector<4x8x8xf32>
    %33 = tpu.matmul %32, %5, %cst_23 {dimension_numbers = #tpu.dot_dimension_numbers<[2], [1], [1], [2], [0, 0, 0, 1, 1, 2], [0], [0]>} : vector<4x8x8xbf16>, vector<4x8x8xbf16>, vector<4x8x8xf32> -> vector<4x8x8xf32>
    %34 = arith.truncf %33 : vector<4x8x8xf32> to vector<4x8x8xbf16>
    %c0_24 = arith.constant 0 : index
    %c0_25 = arith.constant 0 : index
    %c0_26 = arith.constant 0 : index
    %35 = vector.load %arg7[%c0_24, %c0_25, %c0_26] : memref<4x8x32xbf16, #tpu.memory_space<vmem>>, vector<4x8x32xbf16>
    %cst_27 = arith.constant dense<0.000000e+00> : vector<4x8x32xf32>
    %36 = tpu.matmul %34, %35, %cst_27 {dimension_numbers = #tpu.dot_dimension_numbers<[2], [1], [1], [2], [0, 0, 0, 1, 1, 2], [0], [0]>} : vector<4x8x8xbf16>, vector<4x8x32xbf16>, vector<4x8x32xf32> -> vector<4x8x32xf32>
    %cst_28 = arith.constant dense<0.000000e+00> : vector<8x32xf32>
    %37 = vector.multi_reduction <add>, %36, %cst_28 [0] : vector<4x8x32xf32> to vector<8x32xf32>
    %c0_29 = arith.constant 0 : index
    %c0_30 = arith.constant 0 : index
    %38 = vector.load %arg8[%c0_29, %c0_30] : memref<1x32xf32, #tpu.memory_space<vmem>>, vector<1x32xf32>
    %39 = vector.broadcast %38 : vector<1x32xf32> to vector<8x32xf32>
    %40 = arith.addf %37, %39 : vector<8x32xf32>
    %c0_31 = arith.constant 0 : index
    %c0_32 = arith.constant 0 : index
    %c0_33 = arith.constant 0 : index
    %41 = vector.load %arg9[%c0_31, %c0_32, %c0_33] : memref<1x8x32xf32, #tpu.memory_space<vmem>>, vector<1x8x32xf32>
    %42 = vector.shape_cast %41 : vector<1x8x32xf32> to vector<8x32xf32>
    %43 = arith.addf %42, %40 : vector<8x32xf32>
    %c0_34 = arith.constant 0 : index
    %c0_35 = arith.constant 0 : index
    %c0_36 = arith.constant 0 : index
    %44 = vector.load %arg10[%c0_34, %c0_35, %c0_36] : memref<1x8x32xf32, #tpu.memory_space<vmem>>, vector<1x8x32xf32>
    %45 = vector.shape_cast %44 : vector<1x8x32xf32> to vector<8x32xf32>
    %46 = vector.shape_cast %43 : vector<8x32xf32> to vector<1x8x32xf32>
    tpu.vector_store %arg10[%c0_34, %c0_35, %c0_36], %46 {strides = array<i32>} : memref<1x8x32xf32, #tpu.memory_space<vmem>>, vector<1x8x32xf32>,
    return
  }
  func.func @transform_0(%arg0: i32) -> (i32, i32, i32, i32) {
    %c0_i32 = arith.constant 0 : i32
    %c0_i32_0 = arith.constant 0 : i32
    %c0_i32_1 = arith.constant 0 : i32
    %c0_i32_2 = arith.constant 0 : i32
    return %arg0, %c0_i32, %c0_i32_0, %c0_i32_1 : i32, i32, i32, i32
  }
  func.func @transform_1(%arg0: i32) -> (i32, i32, i32, i32) {
    %c0_i32 = arith.constant 0 : i32
    %c0_i32_0 = arith.constant 0 : i32
    %c0_i32_1 = arith.constant 0 : i32
    %c0_i32_2 = arith.constant 0 : i32
    return %arg0, %c0_i32, %c0_i32_0, %c0_i32_1 : i32, i32, i32, i32
  }
  func.func @transform_2(%arg0: i32) -> (i32, i32, i32, i32) {
    %c0_i32 = arith.constant 0 : i32
    %c0_i32_0 = arith.constant 0 : i32
    %c0_i32_1 = arith.constant 0 : i32
    %c0_i32_2 = arith.constant 0 : i32
    return %arg0, %c0_i32, %c0_i32_0, %c0_i32_1 : i32, i32, i32, i32
  }
  func.func @transform_3(%arg0: i32) -> (i32, i32, i32) {
    %c0_i32 = arith.constant 0 : i32
    %c0_i32_0 = arith.constant 0 : i32
    %c0_i32_1 = arith.constant 0 : i32
    return %arg0, %c0_i32, %c0_i32_0 : i32, i32, i32
  }
  func.func @transform_4(%arg0: i32) -> (i32, i32, i32) {
    %c0_i32 = arith.constant 0 : i32
    %c0_i32_0 = arith.constant 0 : i32
    %c0_i32_1 = arith.constant 0 : i32
    return %arg0, %c0_i32, %c0_i32_0 : i32, i32, i32
  }
  func.func @transform_5(%arg0: i32) -> (i32, i32, i32) {
    %c0_i32 = arith.constant 0 : i32
    %c0_i32_0 = arith.constant 0 : i32
    %c0_i32_1 = arith.constant 0 : i32
    %c0_i32_2 = arith.constant 0 : i32
    return %c0_i32, %c0_i32_0, %c0_i32_1 : i32, i32, i32
  }
  func.func @transform_6(%arg0: i32) -> (i32, i32, i32) {
    %c0_i32 = arith.constant 0 : i32
    %c0_i32_0 = arith.constant 0 : i32
    %c0_i32_1 = arith.constant 0 : i32
    %c0_i32_2 = arith.constant 0 : i32
    return %c0_i32, %c0_i32_0, %c0_i32_1 : i32, i32, i32
  }
  func.func @transform_7(%arg0: i32) -> (i32, i32) {
    %c0_i32 = arith.constant 0 : i32
    %c0_i32_0 = arith.constant 0 : i32
    %c0_i32_1 = arith.constant 0 : i32
    return %c0_i32, %c0_i32_0 : i32, i32
  }
  func.func @transform_8(%arg0: i32) -> (i32, i32, i32) {
    %c0_i32 = arith.constant 0 : i32
    %c0_i32_0 = arith.constant 0 : i32
    %c0_i32_1 = arith.constant 0 : i32
    return %arg0, %c0_i32, %c0_i32_0 : i32, i32, i32
  }
  func.func @transform_9(%arg0: i32) -> (i32, i32, i32) {
    %c0_i32 = arith.constant 0 : i32
    %c0_i32_0 = arith.constant 0 : i32
    %c0_i32_1 = arith.constant 0 : i32
    return %arg0, %c0_i32, %c0_i32_0 : i32, i32, i32
  }
}

module attributes {stable_mosaic.version = 11 : i64} {
  func.func @_ln_ffn_kernel(%arg0: i32, %arg1: memref<16x32xf32, #tpu.memory_space<vmem>>, %arg2: memref<1x32xf32, #tpu.memory_space<vmem>>, %arg3: memref<1x32xf32, #tpu.memory_space<vmem>>, %arg4: memref<32x64xbf16, #tpu.memory_space<vmem>>, %arg5: memref<1x64xf32, #tpu.memory_space<vmem>>, %arg6: memref<64x32xbf16, #tpu.memory_space<vmem>>, %arg7: memref<1x32xf32, #tpu.memory_space<vmem>>, %arg8: memref<16x32xf32, #tpu.memory_space<vmem>>) attributes {dimension_semantics = [#tpu.dimension_semantics<parallel>], iteration_bounds = array<i64: 1>, scalar_prefetch = 0 : i64, scratch_operands = 0 : i64, tpu.core_type = #tpu.core_type<tc>, window_params = [{transform_indices = @transform_0, window_bounds = array<i64: 16, 32>}, {pipeline_mode = #tpu.pipeline_mode<synchronous>, transform_indices = @transform_1, window_bounds = array<i64: 1, 32>}, {pipeline_mode = #tpu.pipeline_mode<synchronous>, transform_indices = @transform_2, window_bounds = array<i64: 1, 32>}, {pipeline_mode = #tpu.pipeline_mode<synchronous>, transform_indices = @transform_3, window_bounds = array<i64: 32, 64>}, {pipeline_mode = #tpu.pipeline_mode<synchronous>, transform_indices = @transform_4, window_bounds = array<i64: 1, 64>}, {pipeline_mode = #tpu.pipeline_mode<synchronous>, transform_indices = @transform_5, window_bounds = array<i64: 64, 32>}, {pipeline_mode = #tpu.pipeline_mode<synchronous>, transform_indices = @transform_6, window_bounds = array<i64: 1, 32>}, {transform_indices = @transform_7, window_bounds = array<i64: 16, 32>}]} {
    %c0 = arith.constant 0 : index
    %c0_0 = arith.constant 0 : index
    %0 = vector.load %arg1[%c0, %c0_0] : memref<16x32xf32, #tpu.memory_space<vmem>>, vector<16x32xf32>
    %cst = arith.constant dense<0.000000e+00> : vector<16xf32>
    %1 = vector.multi_reduction <add>, %0, %cst [1] : vector<16x32xf32> to vector<16xf32>
    %2 = vector.shape_cast %1 : vector<16xf32> to vector<16x1xf32>
    %cst_1 = arith.constant 3.200000e+01 : f32
    %3 = vector.broadcast %cst_1 : f32 to vector<16x1xf32>
    %4 = arith.divf %2, %3 : vector<16x1xf32>
    %5 = vector.broadcast %4 : vector<16x1xf32> to vector<16x32xf32>
    %6 = arith.subf %0, %5 : vector<16x32xf32>
    %7 = arith.mulf %6, %6 : vector<16x32xf32>
    %cst_2 = arith.constant dense<0.000000e+00> : vector<16xf32>
    %8 = vector.multi_reduction <add>, %7, %cst_2 [1] : vector<16x32xf32> to vector<16xf32>
    %9 = vector.shape_cast %8 : vector<16xf32> to vector<16x1xf32>
    %cst_3 = arith.constant 3.200000e+01 : f32
    %10 = vector.broadcast %cst_3 : f32 to vector<16x1xf32>
    %11 = arith.divf %9, %10 : vector<16x1xf32>
    %cst_4 = arith.constant 9.99999974E-6 : f32
    %12 = vector.broadcast %cst_4 : f32 to vector<16x1xf32>
    %13 = arith.addf %11, %12 : vector<16x1xf32>
    %14 = math.rsqrt %13 : vector<16x1xf32>
    %15 = vector.broadcast %14 : vector<16x1xf32> to vector<16x32xf32>
    %16 = arith.mulf %6, %15 : vector<16x32xf32>
    %c0_5 = arith.constant 0 : index
    %c0_6 = arith.constant 0 : index
    %17 = vector.load %arg2[%c0_5, %c0_6] : memref<1x32xf32, #tpu.memory_space<vmem>>, vector<1x32xf32>
    %18 = vector.broadcast %17 : vector<1x32xf32> to vector<16x32xf32>
    %19 = arith.mulf %16, %18 : vector<16x32xf32>
    %c0_7 = arith.constant 0 : index
    %c0_8 = arith.constant 0 : index
    %20 = vector.load %arg3[%c0_7, %c0_8] : memref<1x32xf32, #tpu.memory_space<vmem>>, vector<1x32xf32>
    %21 = vector.broadcast %20 : vector<1x32xf32> to vector<16x32xf32>
    %22 = arith.addf %19, %21 : vector<16x32xf32>
    %23 = arith.truncf %22 : vector<16x32xf32> to vector<16x32xbf16>
    %c0_9 = arith.constant 0 : index
    %c0_10 = arith.constant 0 : index
    %24 = vector.load %arg4[%c0_9, %c0_10] : memref<32x64xbf16, #tpu.memory_space<vmem>>, vector<32x64xbf16>
    %cst_11 = arith.constant dense<0.000000e+00> : vector<16x64xf32>
    %25 = tpu.matmul %23, %24, %cst_11 {dimension_numbers = #tpu.dot_dimension_numbers<[1], [0], [0], [1], [0, 0, 1, 1], [], []>} : vector<16x32xbf16>, vector<32x64xbf16>, vector<16x64xf32> -> vector<16x64xf32>
    %c0_12 = arith.constant 0 : index
    %c0_13 = arith.constant 0 : index
    %26 = vector.load %arg5[%c0_12, %c0_13] : memref<1x64xf32, #tpu.memory_space<vmem>>, vector<1x64xf32>
    %27 = vector.broadcast %26 : vector<1x64xf32> to vector<16x64xf32>
    %28 = arith.addf %25, %27 : vector<16x64xf32>
    %cst_14 = arith.constant 0.000000e+00 : f32
    %29 = vector.broadcast %cst_14 : f32 to vector<16x64xf32>
    %30 = arith.maximumf %28, %29 : vector<16x64xf32>
    %31 = arith.truncf %30 : vector<16x64xf32> to vector<16x64xbf16>
    %c0_15 = arith.constant 0 : index
    %c0_16 = arith.constant 0 : index
    %32 = vector.load %arg6[%c0_15, %c0_16] : memref<64x32xbf16, #tpu.memory_space<vmem>>, vector<64x32xbf16>
    %cst_17 = arith.constant dense<0.000000e+00> : vector<16x32xf32>
    %33 = tpu.matmul %31, %32, %cst_17 {dimension_numbers = #tpu.dot_dimension_numbers<[1], [0], [0], [1], [0, 0, 1, 1], [], []>} : vector<16x64xbf16>, vector<64x32xbf16>, vector<16x32xf32> -> vector<16x32xf32>
    %c0_18 = arith.constant 0 : index
    %c0_19 = arith.constant 0 : index
    %34 = vector.load %arg7[%c0_18, %c0_19] : memref<1x32xf32, #tpu.memory_space<vmem>>, vector<1x32xf32>
    %35 = vector.broadcast %34 : vector<1x32xf32> to vector<16x32xf32>
    %36 = arith.addf %33, %35 : vector<16x32xf32>
    %37 = arith.addf %0, %36 : vector<16x32xf32>
    %c0_20 = arith.constant 0 : index
    %c0_21 = arith.constant 0 : index
    %38 = vector.load %arg8[%c0_20, %c0_21] : memref<16x32xf32, #tpu.memory_space<vmem>>, vector<16x32xf32>
    tpu.vector_store %arg8[%c0_20, %c0_21], %37 {strides = array<i32>} : memref<16x32xf32, #tpu.memory_space<vmem>>, vector<16x32xf32>,
    return
  }
  func.func @transform_0(%arg0: i32) -> (i32, i32) {
    %c0_i32 = arith.constant 0 : i32
    %c0_i32_0 = arith.constant 0 : i32
    return %arg0, %c0_i32 : i32, i32
  }
  func.func @transform_1(%arg0: i32) -> (i32, i32) {
    %c0_i32 = arith.constant 0 : i32
    %c0_i32_0 = arith.constant 0 : i32
    %c0_i32_1 = arith.constant 0 : i32
    return %c0_i32, %c0_i32_0 : i32, i32
  }
  func.func @transform_2(%arg0: i32) -> (i32, i32) {
    %c0_i32 = arith.constant 0 : i32
    %c0_i32_0 = arith.constant 0 : i32
    %c0_i32_1 = arith.constant 0 : i32
    return %c0_i32, %c0_i32_0 : i32, i32
  }
  func.func @transform_3(%arg0: i32) -> (i32, i32) {
    %c0_i32 = arith.constant 0 : i32
    %c0_i32_0 = arith.constant 0 : i32
    %c0_i32_1 = arith.constant 0 : i32
    return %c0_i32, %c0_i32_0 : i32, i32
  }
  func.func @transform_4(%arg0: i32) -> (i32, i32) {
    %c0_i32 = arith.constant 0 : i32
    %c0_i32_0 = arith.constant 0 : i32
    %c0_i32_1 = arith.constant 0 : i32
    return %c0_i32, %c0_i32_0 : i32, i32
  }
  func.func @transform_5(%arg0: i32) -> (i32, i32) {
    %c0_i32 = arith.constant 0 : i32
    %c0_i32_0 = arith.constant 0 : i32
    %c0_i32_1 = arith.constant 0 : i32
    return %c0_i32, %c0_i32_0 : i32, i32
  }
  func.func @transform_6(%arg0: i32) -> (i32, i32) {
    %c0_i32 = arith.constant 0 : i32
    %c0_i32_0 = arith.constant 0 : i32
    %c0_i32_1 = arith.constant 0 : i32
    return %c0_i32, %c0_i32_0 : i32, i32
  }
  func.func @transform_7(%arg0: i32) -> (i32, i32) {
    %c0_i32 = arith.constant 0 : i32
    %c0_i32_0 = arith.constant 0 : i32
    return %arg0, %c0_i32 : i32, i32
  }
}

module attributes {stable_mosaic.version = 11 : i64} {
  func.func @_ln_matmul_kernel(%arg0: i32, %arg1: memref<16x32xf32, #tpu.memory_space<vmem>>, %arg2: memref<1x32xf32, #tpu.memory_space<vmem>>, %arg3: memref<1x32xf32, #tpu.memory_space<vmem>>, %arg4: memref<32x2xf32, #tpu.memory_space<vmem>>, %arg5: memref<1x2xf32, #tpu.memory_space<vmem>>, %arg6: memref<16x2xf32, #tpu.memory_space<vmem>>) attributes {dimension_semantics = [#tpu.dimension_semantics<parallel>], iteration_bounds = array<i64: 1>, scalar_prefetch = 0 : i64, scratch_operands = 0 : i64, tpu.core_type = #tpu.core_type<tc>, window_params = [{transform_indices = @transform_0, window_bounds = array<i64: 16, 32>}, {pipeline_mode = #tpu.pipeline_mode<synchronous>, transform_indices = @transform_1, window_bounds = array<i64: 1, 32>}, {pipeline_mode = #tpu.pipeline_mode<synchronous>, transform_indices = @transform_2, window_bounds = array<i64: 1, 32>}, {pipeline_mode = #tpu.pipeline_mode<synchronous>, transform_indices = @transform_3, window_bounds = array<i64: 32, 2>}, {pipeline_mode = #tpu.pipeline_mode<synchronous>, transform_indices = @transform_4, window_bounds = array<i64: 1, 2>}, {transform_indices = @transform_5, window_bounds = array<i64: 16, 2>}]} {
    %c0 = arith.constant 0 : index
    %c0_0 = arith.constant 0 : index
    %0 = vector.load %arg1[%c0, %c0_0] : memref<16x32xf32, #tpu.memory_space<vmem>>, vector<16x32xf32>
    %cst = arith.constant dense<0.000000e+00> : vector<16xf32>
    %1 = vector.multi_reduction <add>, %0, %cst [1] : vector<16x32xf32> to vector<16xf32>
    %2 = vector.shape_cast %1 : vector<16xf32> to vector<16x1xf32>
    %cst_1 = arith.constant 3.200000e+01 : f32
    %3 = vector.broadcast %cst_1 : f32 to vector<16x1xf32>
    %4 = arith.divf %2, %3 : vector<16x1xf32>
    %5 = vector.broadcast %4 : vector<16x1xf32> to vector<16x32xf32>
    %6 = arith.subf %0, %5 : vector<16x32xf32>
    %7 = arith.mulf %6, %6 : vector<16x32xf32>
    %cst_2 = arith.constant dense<0.000000e+00> : vector<16xf32>
    %8 = vector.multi_reduction <add>, %7, %cst_2 [1] : vector<16x32xf32> to vector<16xf32>
    %9 = vector.shape_cast %8 : vector<16xf32> to vector<16x1xf32>
    %cst_3 = arith.constant 3.200000e+01 : f32
    %10 = vector.broadcast %cst_3 : f32 to vector<16x1xf32>
    %11 = arith.divf %9, %10 : vector<16x1xf32>
    %cst_4 = arith.constant 9.99999974E-6 : f32
    %12 = vector.broadcast %cst_4 : f32 to vector<16x1xf32>
    %13 = arith.addf %11, %12 : vector<16x1xf32>
    %14 = math.rsqrt %13 : vector<16x1xf32>
    %15 = vector.broadcast %14 : vector<16x1xf32> to vector<16x32xf32>
    %16 = arith.mulf %6, %15 : vector<16x32xf32>
    %c0_5 = arith.constant 0 : index
    %c0_6 = arith.constant 0 : index
    %17 = vector.load %arg2[%c0_5, %c0_6] : memref<1x32xf32, #tpu.memory_space<vmem>>, vector<1x32xf32>
    %18 = vector.broadcast %17 : vector<1x32xf32> to vector<16x32xf32>
    %19 = arith.mulf %16, %18 : vector<16x32xf32>
    %c0_7 = arith.constant 0 : index
    %c0_8 = arith.constant 0 : index
    %20 = vector.load %arg3[%c0_7, %c0_8] : memref<1x32xf32, #tpu.memory_space<vmem>>, vector<1x32xf32>
    %21 = vector.broadcast %20 : vector<1x32xf32> to vector<16x32xf32>
    %22 = arith.addf %19, %21 : vector<16x32xf32>
    %c0_9 = arith.constant 0 : index
    %c0_10 = arith.constant 0 : index
    %23 = vector.load %arg4[%c0_9, %c0_10] : memref<32x2xf32, #tpu.memory_space<vmem>>, vector<32x2xf32>
    %cst_11 = arith.constant dense<0.000000e+00> : vector<16x2xf32>
    %24 = tpu.matmul %22, %23, %cst_11 {dimension_numbers = #tpu.dot_dimension_numbers<[1], [0], [0], [1], [0, 0, 1, 1], [], []>} : vector<16x32xf32>, vector<32x2xf32>, vector<16x2xf32> -> vector<16x2xf32>
    %c0_12 = arith.constant 0 : index
    %c0_13 = arith.constant 0 : index
    %25 = vector.load %arg5[%c0_12, %c0_13] : memref<1x2xf32, #tpu.memory_space<vmem>>, vector<1x2xf32>
    %26 = vector.broadcast %25 : vector<1x2xf32> to vector<16x2xf32>
    %27 = arith.addf %24, %26 : vector<16x2xf32>
    %cst_14 = arith.constant dense<0xFF800000> : vector<16xf32>
    %28 = vector.multi_reduction <maximumf>, %27, %cst_14 [1] : vector<16x2xf32> to vector<16xf32>
    %29 = vector.shape_cast %28 : vector<16xf32> to vector<16x1xf32>
    %30 = vector.broadcast %29 : vector<16x1xf32> to vector<16x2xf32>
    %31 = arith.subf %27, %30 : vector<16x2xf32>
    %32 = math.exp %31 : vector<16x2xf32>
    %cst_15 = arith.constant dense<0.000000e+00> : vector<16xf32>
    %33 = vector.multi_reduction <add>, %32, %cst_15 [1] : vector<16x2xf32> to vector<16xf32>
    %34 = vector.shape_cast %33 : vector<16xf32> to vector<16x1xf32>
    %35 = math.log %34 : vector<16x1xf32>
    %36 = vector.broadcast %35 : vector<16x1xf32> to vector<16x2xf32>
    %37 = arith.subf %31, %36 : vector<16x2xf32>
    %c0_16 = arith.constant 0 : index
    %c0_17 = arith.constant 0 : index
    %38 = vector.load %arg6[%c0_16, %c0_17] : memref<16x2xf32, #tpu.memory_space<vmem>>, vector<16x2xf32>
    tpu.vector_store %arg6[%c0_16, %c0_17], %37 {strides = array<i32>} : memref<16x2xf32, #tpu.memory_space<vmem>>, vector<16x2xf32>,
    return
  }
  func.func @transform_0(%arg0: i32) -> (i32, i32) {
    %c0_i32 = arith.constant 0 : i32
    %c0_i32_0 = arith.constant 0 : i32
    return %arg0, %c0_i32 : i32, i32
  }
  func.func @transform_1(%arg0: i32) -> (i32, i32) {
    %c0_i32 = arith.constant 0 : i32
    %c0_i32_0 = arith.constant 0 : i32
    %c0_i32_1 = arith.constant 0 : i32
    return %c0_i32, %c0_i32_0 : i32, i32
  }
  func.func @transform_2(%arg0: i32) -> (i32, i32) {
    %c0_i32 = arith.constant 0 : i32
    %c0_i32_0 = arith.constant 0 : i32
    %c0_i32_1 = arith.constant 0 : i32
    return %c0_i32, %c0_i32_0 : i32, i32
  }
  func.func @transform_3(%arg0: i32) -> (i32, i32) {
    %c0_i32 = arith.constant 0 : i32
    %c0_i32_0 = arith.constant 0 : i32
    %c0_i32_1 = arith.constant 0 : i32
    return %c0_i32, %c0_i32_0 : i32, i32
  }
  func.func @transform_4(%arg0: i32) -> (i32, i32) {
    %c0_i32 = arith.constant 0 : i32
    %c0_i32_0 = arith.constant 0 : i32
    %c0_i32_1 = arith.constant 0 : i32
    return %c0_i32, %c0_i32_0 : i32, i32
  }
  func.func @transform_5(%arg0: i32) -> (i32, i32) {
    %c0_i32 = arith.constant 0 : i32
    %c0_i32_0 = arith.constant 0 : i32
    return %arg0, %c0_i32 : i32, i32
  }
}

</mosaic_0001>

<bundles_post_ra>
// kernel: multi_relation_transformer_3d.8
= control target key start
LH: loop header
LB: loop body
LE: loop exit
PB: predicated region body
PF: predicated region fallthrough
CT: control target
= control target key end

     0   :  { %vm31_vm0 = vcmask 1043456   ;;  %vm24_vm1 = vcmask 31744   ;;  %vm110_vm2 = vcmask 261120   ;;  %s167_s1 = inlined_call_operand.vmem [shape: f32[4,32], index: 1, kind: input, shape index: {}]   ;;  %s168_s0 = inlined_call_operand.vmem [shape: f32[16,4], index: 0, kind: input, shape index: {}]   ;;  %s169_s2 = inlined_call_operand.vmem [shape: f32[1,32], index: 2, kind: input, shape index: {}]   ;;  %s170_s3 = inlined_call_operand.vmem [shape: f32[16,32], index: 3, kind: output, shape index: {}]  }
   0x1   :  { %v16_v0 = vld [vmem:[%s167_s1] sm:$0xf]  ;;  %v15_v2 = vld [vmem:[%s168_s0 + $0x8] sm:$0xff] }
   0x2   :  { %v14_v1 = vld [vmem:[%s168_s0] sm:$0xff]  ;;  %124 = vmatprep.subr.msk.mxu0 %vm31_vm0, %v16_v0 }
   0x3   :  { %126 = vmatprep.mubr.msk.f32.mxu0 %vm24_vm1, %v14_v1  ;;  %125 = vmatpush3.msk.msra.mxu0 %vm31_vm0, %v16_v0  ;;  %v117_v3 = vld [vmem:[%s169_s2] ss:$0 sm:$0xff] }
   0x4   :  { %127 = vmatmul.mubr.msk.f32.vlgmr.msra.gmra.mxu0 %vm24_vm1, %v15_v2 }
  0xc4   :  { %v128_v4 = vpop.f32.mrf.mxu0 }
  0xc5   :  { %v107_v5 = vadd.f32 %v128_v4, %v117_v3 }
  0xc6   :  { %v101_v6 = vpop.f32.mrf.mxu0 }
  0xc7   :  { %112 = vst.msk [vmem:[%s170_s3 + $0x8] sm:$0xff] %vm110_vm2, %v107_v5  ;;  %v102_v7 = vadd.f32 %v117_v3, %v101_v6 }
  0xc9   :  { %111 = vst.msk [vmem:[%s170_s3] sm:$0xff] %vm110_vm2, %v102_v7 }

// kernel: multi_relation_transformer_3d.9
= control target key start
LH: loop header
LB: loop body
LE: loop exit
PB: predicated region body
PF: predicated region fallthrough
CT: control target
= control target key end

     0   :  { %vm23_vm0 = vcmask 261120   ;;  %v181_v14 = vmov 0.0   ;;  %vm182_vm1 = vmmov 0   ;;  %vm145_vm2 = vcmask 781312   ;;  %s245_s0 = inlined_call_operand.vmem [shape: f32[16,32], index: 0, kind: input, shape index: {}]   ;;  %s246_s3 = inlined_call_operand.vmem [shape: bf16[32,96], index: 3, kind: input, shape index: {}]   ;;  %s247_s1 = inlined_call_operand.vmem [shape: f32[1,32], index: 1, kind: input, shape index: {}]   ;;  %s248_s2 = inlined_call_operand.vmem [shape: f32[1,32], index: 2, kind: input, shape index: {}]   ;;  %s249_s4 = inlined_call_operand.vmem [shape: f32[1,96], index: 4, kind: input, shape index: {}]   ;;  %s250_s5 = inlined_call_operand.vmem [shape: bf16[16,96], index: 5, kind: output, shape index: {}]  }
   0x1   :  { %v21_v0 = vld [vmem:[%s245_s0] sm:$0xff]  ;;  %v22_v1 = vld [vmem:[%s245_s0 + $0x8] sm:$0xff]  ;;  %165 = vmatprep.subr.bf16.mxu0 %v181_v14  ;;  %169 = vmatprep.mubr.msk.bf16.mxu0 %vm182_vm1, %v181_v14 }
   0x2   :  { %v24_v2 = vsel %vm23_vm0, %v21_v0, 0.0  ;;  %v27_v3 = vsel %vm23_vm0, %v22_v1, 0.0  ;;  %v175_v15 = vld [vmem:[%s246_s3 + $0x8] sm:$0xff]   ;;  %v176_v16 = vld [vmem:[%s246_s3] sm:$0xff]  }
   0x3   :  { %25 = vadd.xlane.f32.xlu0 %v24_v2  ;;  %166 = vmatpush3.bf16.msra.mxu0 %v175_v15  ;;  %v152_v25 = vld [vmem:[%s247_s1] ss:$0 sm:$0xff] }
   0x4   :  { %167 = vmatprep.subr.bf16.mxu0 %v181_v14  ;;  %v153_v29 = vld [vmem:[%s248_s2] ss:$0 sm:$0xff] }
   0x5   :  { %v154_v34 = vld [vmem:[%s249_s4] ss:$0 sm:$0xff] }
   0x7   :  { %28 = vadd.xlane.f32.xlu0 %v27_v3  ;;  %168 = vmatpush3.bf16.msra.mxu0 %v176_v16 }
  0x8c   :  { %v26_v4 = vpop.xlane.xlu0 %25 }
  0x8d   :  { %v31_v5 = vmul.f32 0.03125, %v26_v4 }
  0x8f   :  { %v33_v6 = vsub.f32 %v21_v0, %v31_v5 }
  0x90   :  { %v29_v7 = vpop.xlane.xlu0 %28 }
  0x91   :  { %v32_v8 = vmul.f32 0.03125, %v29_v7  ;;  %v35_v9 = vmul.f32 %v33_v6, %v33_v6 }
  0x93   :  { %v34_v10 = vsub.f32 %v22_v1, %v32_v8  ;;  %v37_v11 = vsel %vm23_vm0, %v35_v9, 0.0 }
  0x94   :  { %38 = vadd.xlane.f32.xlu1 %v37_v11 }
  0x95   :  { %v36_v12 = vmul.f32 %v34_v10, %v34_v10 }
  0x97   :  { %v40_v13 = vsel %vm23_vm0, %v36_v12, 0.0 }
  0x98   :  { %41 = vadd.xlane.f32.xlu1 %v40_v13 }
 0x11d   :  { %v39_v17 = vpop.xlane.xlu1 %38 }
 0x11e   :  { %v43_v18 = vmul.f32 0.03125, %v39_v17 }
 0x120   :  { %v45_v19 = vadd.f32 1e-05, %v43_v18 }
 0x121   :  { %v42_v20 = vpop.xlane.xlu1 %41 }
 0x122   :  { %177 = vrsqrt.f32 %v45_v19  ;;  %v44_v21 = vmul.f32 0.03125, %v42_v20 }
 0x124   :  { %v46_v22 = vadd.f32 1e-05, %v44_v21 }
 0x126   :  { %179 = vrsqrt.f32 %v46_v22 }
 0x12f   :  { %v178_v23 = vpop.eup %177 }
 0x130   :  { %v49_v24 = vmul.f32 %v178_v23, %v33_v6 }
 0x132   :  { %v58_v28 = vmul.f32 %v152_v25, %v49_v24 }
 0x133   :  { %v180_v26 = vpop.eup %179 }
 0x134   :  { %v50_v27 = vmul.f32 %v180_v26, %v34_v10  ;;  %v67_v31 = vadd.f32 %v153_v29, %v58_v28 }
 0x136   :  { %v59_v30 = vmul.f32 %v152_v25, %v50_v27 }
 0x138   :  { %v68_v32 = vadd.f32 %v153_v29, %v59_v30 }
 0x13a   :  { %v69_v33 = vpack.c.bf16 %v68_v32, %v67_v31 }
 0x13c   :  { %170 = vmatmul.mubr.msk.bf16.vlgmr.msra.gmra.mxu0 %vm23_vm0, %v69_v33 }
 0x1fc   :  { %v130_v35 = vpop.f32.mrf.mxu0 }
 0x1fd   :  { %v131_v36 = vadd.f32 %v154_v34, %v130_v35 }
 0x1fe   :  { %v171_v37 = vpop.f32.mrf.mxu0 }
 0x1ff   :  { %v160_v38 = vpack.c.bf16 %v131_v36, %v131_v36 }
 0x200   :  { %v133_v39 = vpop.f32.mrf.mxu0 }
 0x201   :  { %146 = vst.msk [vmem:[%s250_s5] sm:$0xf] %vm145_vm2, %v160_v38  ;;  %v134_v40 = vadd.f32 %v154_v34, %v133_v39 }
 0x202   :  { %v172_v41 = vpop.f32.mrf.mxu0 }
 0x203   :  { %v161_v42 = vpack.c.bf16 %v134_v40, %v134_v40 }
 0x205   :  { %147 = vst.msk [vmem:[%s250_s5 + $0x4] sm:$0xf] %vm145_vm2, %v161_v42 }

// kernel: multi_relation_transformer_3d.11
= control target key start
LH: loop header
LB: loop body
LE: loop exit
PB: predicated region body
PF: predicated region fallthrough
CT: control target
= control target key end

     0   :  { %vm29_vm0 = vcmask 261120   ;;  %v290_v14 = vmov 0.0   ;;  %vm291_vm1 = vmmov 0   ;;  %vm185_vm2 = vcmask 523264   ;;  %s391_s0 = inlined_call_operand.vmem [shape: f32[16,32], index: 0, kind: input, shape index: {}]   ;;  %s392_s3 = inlined_call_operand.vmem [shape: bf16[32,64], index: 3, kind: input, shape index: {}]   ;;  %s393_s5 = inlined_call_operand.vmem [shape: bf16[64,32], index: 5, kind: input, shape index: {}]   ;;  %s394_s1 = inlined_call_operand.vmem [shape: f32[1,32], index: 1, kind: input, shape index: {}]   ;;  %s395_s2 = inlined_call_operand.vmem [shape: f32[1,32], index: 2, kind: input, shape index: {}]   ;;  %s396_s4 = inlined_call_operand.vmem [shape: f32[1,64], index: 4, kind: input, shape index: {}]   ;;  %s397_s6 = inlined_call_operand.vmem [shape: f32[1,32], index: 6, kind: input, shape index: {}]   ;;  %s398_s7 = inlined_call_operand.vmem [shape: f32[16,32], index: 7, kind: output, shape index: {}]  }
   0x1   :  { %v335_v0 = vld [vmem:[%s391_s0] sm:$0xff]  ;;  %v340_v1 = vld [vmem:[%s391_s0 + $0x8] sm:$0xff]  ;;  %258 = vmatprep.subr.bf16.mxu0 %v290_v14  ;;  %262 = vmatprep.mubr.msk.bf16.mxu0 %vm291_vm1, %v290_v14  ;;  %v282_v17 = vld [vmem:[%s393_s5 + $0x18] sm:$0xff]  }
   0x2   :  { %v30_v2 = vsel %vm29_vm0, %v335_v0, 0.0  ;;  %v33_v3 = vsel %vm29_vm0, %v340_v1, 0.0  ;;  %v280_v15 = vld [vmem:[%s392_s3 + $0x8] sm:$0xff]   ;;  %266 = vmatprep.subr.bf16.mxu1 %v290_v14  ;;  %274 = vmatprep.mubr.msk.bf16.mxu1 %vm291_vm1, %v290_v14  ;;  %v281_v16 = vld [vmem:[%s392_s3] sm:$0xff]   ;;  %v283_v35 = vld [vmem:[%s393_s5 + $0x10] sm:$0xff]  }
   0x3   :  { %31 = vadd.xlane.f32.xlu0 %v30_v2  ;;  %259 = vmatpush3.bf16.msra.mxu0 %v280_v15  ;;  %v238_v26 = vld [vmem:[%s394_s1] ss:$0 sm:$0xff]  ;;  %v284_v36 = vld [vmem:[%s393_s5 + $0x8] sm:$0xff]  }
   0x4   :  { %260 = vmatprep.subr.bf16.mxu0 %v290_v14  ;;  %267 = vmatpush3.bf16.msra.mxu1 %v282_v17  ;;  %v239_v30 = vld [vmem:[%s395_s2] ss:$0 sm:$0xff] }
   0x5   :  { %268 = vmatprep.subr.bf16.mxu1 %v290_v14  ;;  %v285_v37 = vld [vmem:[%s393_s5] sm:$0xff]  }
   0x6   :  { %v240_v38 = vld [vmem:[%s396_s4] ss:$0 sm:$0xff] }
   0x7   :  { %34 = vadd.xlane.f32.xlu0 %v33_v3  ;;  %261 = vmatpush3.bf16.msra.mxu0 %v281_v16  ;;  %v244_v48 = vld [vmem:[%s397_s6] ss:$0 sm:$0xff] }
   0x8   :  { %269 = vmatpush3.bf16.msra.mxu1 %v283_v35 }
   0x9   :  { %270 = vmatprep.subr.bf16.mxu1 %v290_v14 }
   0xc   :  { %271 = vmatpush3.bf16.msra.mxu1 %v284_v36 }
   0xd   :  { %272 = vmatprep.subr.bf16.mxu1 %v290_v14 }
  0x10   :  { %273 = vmatpush3.bf16.msra.mxu1 %v285_v37 }
  0x8c   :  { %v32_v4 = vpop.xlane.xlu0 %31 }
  0x8d   :  { %v37_v5 = vmul.f32 0.03125, %v32_v4 }
  0x8f   :  { %v39_v6 = vsub.f32 %v335_v0, %v37_v5 }
  0x90   :  { %v35_v7 = vpop.xlane.xlu0 %34 }
  0x91   :  { %v38_v8 = vmul.f32 0.03125, %v35_v7  ;;  %v41_v9 = vmul.f32 %v39_v6, %v39_v6 }
  0x93   :  { %v40_v10 = vsub.f32 %v340_v1, %v38_v8  ;;  %v43_v11 = vsel %vm29_vm0, %v41_v9, 0.0 }
  0x94   :  { %44 = vadd.xlane.f32.xlu1 %v43_v11 }
  0x95   :  { %v42_v12 = vmul.f32 %v40_v10, %v40_v10 }
  0x97   :  { %v46_v13 = vsel %vm29_vm0, %v42_v12, 0.0 }
  0x98   :  { %47 = vadd.xlane.f32.xlu1 %v46_v13 }
 0x11d   :  { %v45_v18 = vpop.xlane.xlu1 %44 }
 0x11e   :  { %v49_v19 = vmul.f32 0.03125, %v45_v18 }
 0x120   :  { %v51_v20 = vadd.f32 1e-05, %v49_v19 }
 0x121   :  { %v48_v21 = vpop.xlane.xlu1 %47 }
 0x122   :  { %286 = vrsqrt.f32 %v51_v20  ;;  %v50_v22 = vmul.f32 0.03125, %v48_v21 }
 0x124   :  { %v52_v23 = vadd.f32 1e-05, %v50_v22 }
 0x126   :  { %288 = vrsqrt.f32 %v52_v23 }
 0x12f   :  { %v287_v24 = vpop.eup %286 }
 0x130   :  { %v55_v25 = vmul.f32 %v287_v24, %v39_v6 }
 0x132   :  { %v64_v29 = vmul.f32 %v238_v26, %v55_v25 }
 0x133   :  { %v289_v27 = vpop.eup %288 }
 0x134   :  { %v56_v28 = vmul.f32 %v289_v27, %v40_v10  ;;  %v73_v32 = vadd.f32 %v239_v30, %v64_v29 }
 0x136   :  { %v65_v31 = vmul.f32 %v238_v26, %v56_v28 }
 0x138   :  { %v74_v33 = vadd.f32 %v239_v30, %v65_v31 }
 0x13a   :  { %v75_v34 = vpack.c.bf16 %v74_v33, %v73_v32 }
 0x13c   :  { %263 = vmatmul.mubr.msk.bf16.vlgmr.msra.gmra.mxu0 %vm29_vm0, %v75_v34 }
 0x1fc   :  { %v136_v39 = vpop.f32.mrf.mxu0 }
 0x1fd   :  { %v137_v41 = vadd.f32 %v240_v38, %v136_v39 }
 0x1fe   :  { %v264_v40 = vpop.f32.mrf.mxu0 }
 0x1ff   :  { %v143_v45 = vmax.f32 %v137_v41, 0.0 }
 0x200   :  { %v139_v42 = vpop.f32.mrf.mxu0 }
 0x201   :  { %v140_v43 = vadd.f32 %v240_v38, %v139_v42 }
 0x202   :  { %v265_v44 = vpop.f32.mrf.mxu0 }
 0x203   :  { %v144_v46 = vmax.f32 %v140_v43, 0.0 }
 0x205   :  { %v145_v47 = vpack.c.bf16 %v144_v46, %v143_v45 }
 0x207   :  { %275 = vmatmul.mubr.msk.bf16.vlgmr.msra.gmra.mxu1 %vm185_vm2, %v145_v47 }
 0x2c7   :  { %v223_v49 = vpop.f32.mrf.mxu1 }
 0x2c8   :  { %v224_v50 = vadd.f32 %v244_v48, %v223_v49 }
 0x2c9   :  { %v276_v51 = vpop.f32.mrf.mxu1 }
 0x2ca   :  { %v230_v52 = vadd.f32 %v224_v50, %v335_v0 }
 0x2cb   :  { %v226_v53 = vpop.f32.mrf.mxu1 }
 0x2cc   :  { %232 = vst.msk [vmem:[%s398_s7] sm:$0xff] %vm29_vm0, %v230_v52  ;;  %v227_v54 = vadd.f32 %v244_v48, %v226_v53 }
 0x2cd   :  { %v277_v55 = vpop.f32.mrf.mxu1 }
 0x2ce   :  { %v231_v56 = vadd.f32 %v227_v54, %v340_v1 }
 0x2d0   :  { %233 = vst.msk [vmem:[%s398_s7 + $0x8] sm:$0xff] %vm29_vm0, %v231_v56 }

// kernel: multi_relation_transformer_3d.10
= control target key start
LH: loop header
LB: loop body
LE: loop exit
PB: predicated region body
PF: predicated region fallthrough
CT: control target
= control target key end

     0   :  { %s1458_s30 = smov 0   ;;  %s1605_s0 = inlined_call_operand.vmem [shape: bf16[2,4,8,8], index: 0, kind: input, shape index: {}]   ;;  %s1606_s1 = inlined_call_operand.vmem [shape: bf16[2,4,8,8], index: 1, kind: input, shape index: {}]   ;;  %s1607_s2 = inlined_call_operand.vmem [shape: bf16[2,4,8,8], index: 2, kind: input, shape index: {}]   ;;  %s1608_s3 = inlined_call_operand.vmem [shape: f32[2,8,8], index: 3, kind: input, shape index: {}]   ;;  %s1609_s4 = inlined_call_operand.vmem [shape: f32[2,1,8], index: 4, kind: input, shape index: {}]   ;;  %s1610_s5 = inlined_call_operand.vmem [shape: f32[4,1,1], index: 5, kind: input, shape index: {}]   ;;  %s1611_s6 = inlined_call_operand.vmem [shape: bf16[4,8,32], index: 6, kind: input, shape index: {}]   ;;  %s1612_s7 = inlined_call_operand.vmem [shape: f32[1,32], index: 7, kind: input, shape index: {}]   ;;  %s1613_s8 = inlined_call_operand.vmem [shape: f32[2,8,32], index: 8, kind: input, shape index: {}]   ;;  %s1614_s9 = inlined_call_operand.vmem [shape: f32[2,8,32], index: 9, kind: output, shape index: {}]  }
   0x1 LB: > { %s1235_s10 = sadd.s32 4294967295, %s1403_s30   ;;  %p1239_p0 = scmp.ge.s32.totalorder %s1403_s30, 1  ;;  %s1403_s30 = sphi %s1458_s30, %s19_s30  }
   0x2   : > { %p333_p1 = scmp.lt.s32.totalorder %s1403_s30, 3 }
   0x4   : > { %p334_p2 = pnand %p1239_p0, %p333_p1 }
   0x5   : > { %p389_p3 = scmp.lt.s32.totalorder (!%p334_p2), %s1235_s10, 1 }
   0x6   : > { %337 = sbr.rel (%p334_p2) target bundleno = 944 (0x3b0), region = 56 }
   0xb   : > { %v1405_v0 = vmov 0.0   ;;  %v1253_v1 = vld [vmem:[%s1610_s5] ss:$0 sm:$0xff]  ;;  %v1255_v2 = vld [vmem:[%s1610_s5 + $0x2] ss:$0 sm:$0xff]  ;;  %s1616_s10 = smov (!%p389_p3, %s1235_s10), 1 }
   0xc   : > { %1296 = vmatprep.subr.bf16.mxu0 %v1405_v0  ;;  %1302 = vmatprep.subr.bf16.mxu1 %v1405_v0  ;;  %vm1406_vm0 = vmmov 0   ;;  %v1407_v3 = vmov 0   ;;  %s1481_s15 = sshll.u32 %s1616_s10, 4  ;;  %vm432_vm1 = vcmask 64512   ;;  %v1254_v8 = vld [vmem:[%s1610_s5 + $0x1] ss:$0 sm:$0xff]  ;;  %s410_s13 = scalar_lea.vmem %s1609_s4, %s1616_s10 }
   0xd   : > { %1298 = vmatprep.mubr.msk.bf16.mxu0 %vm1406_vm0, %v1405_v0  ;;  %1304 = vmatprep.mubr.msk.bf16.mxu1 %vm1406_vm0, %v1405_v0  ;;  %s398_s18 = scalar_lea.vmem %s1606_s1, %s1481_s15  ;;  %v1256_v9 = vld [vmem:[%s1610_s5 + $0x3] ss:$0 sm:$0xff]  ;;  %s393_s25 = scalar_lea.vmem %s1605_s0, %s1481_s15  ;;  %v1257_v30 = vld [vmem:[%s410_s13] ss:$0 sm:$0xff]  ;;  %vm732_vm2 = vcmask 1043456   ;;  %vm1106_vm3 = vcmask 261120  }
   0xe   : > { %1379 = vset.pattern.permute.xlu0 %v1407_v3  ;;  %1380 = vset.pattern.permute.xlu1 %v1407_v3  ;;  %v424_v4 = vld [vmem:[%s398_s18] sm:$0xf]  ;;  %v425_v5 = vld [vmem:[%s398_s18 + $0x4] sm:$0xf]  ;;  %v426_v10 = vld [vmem:[%s398_s18 + $0x8] sm:$0xf]  ;;  %s403_s16 = scalar_lea.vmem %s1607_s2, %s1481_s15 }
   0xf   : > { %647 = vperm.xlu0 %1379, %v1253_v1   ;;  %655 = vperm.xlu1 %1380, %v1255_v2   ;;  %v437_v6 = vsel %vm432_vm1, %v424_v4, 0  ;;  %v483_v7 = vsel %vm432_vm1, %v425_v5, 0  ;;  %v427_v11 = vld [vmem:[%s398_s18 + $0xc] sm:$0xf]  ;;  %v420_v12 = vld [vmem:[%s393_s25] sm:$0xf] }
  0x10   : > { %1297 = vmatpush3.bf16.xpose.msra.mxu0 %v437_v6  ;;  %1303 = vmatpush3.bf16.xpose.msra.mxu1 %v483_v7  ;;  %v421_v13 = vld [vmem:[%s393_s25 + $0x4] sm:$0xf]  ;;  %v529_v14 = vsel %vm432_vm1, %v426_v10, 0  ;;  %v575_v15 = vsel %vm432_vm1, %v427_v11, 0  ;;  %v422_v16 = vld [vmem:[%s393_s25 + $0x8] sm:$0xf] }
  0x11   : > { %1308 = vmatprep.subr.bf16.mxu0 %v1405_v0  ;;  %1314 = vmatprep.subr.bf16.mxu1 %v1405_v0  ;;  %v423_v17 = vld [vmem:[%s393_s25 + $0xc] sm:$0xf]  ;;  %s1518_s26 = sshll.u32 %s1616_s10, 3 }
  0x12   : > { %s407_s29 = scalar_lea.vmem %s1608_s3, %s1518_s26  ;;  %s414_s27 = scalar_lea.vmem %s1613_s8, %s1518_s26 }
  0x13   : > { %651 = vperm.xlu0 %1379, %v1254_v8   ;;  %659 = vperm.xlu1 %1380, %v1256_v9   ;;  %v625_v19 = vld [vmem:[%s407_s29] sm:$0xff]  ;;  %s418_s13 = scalar_lea.vmem %s1614_s9, %s1518_s26 }
  0x17   : > { %1299 = vmatmul.mubr.msk.bf16.vlgmr.msra.gmra.mxu0 %vm432_vm1, %v420_v12  ;;  %1305 = vmatmul.mubr.msk.bf16.vlgmr.msra.gmra.mxu1 %vm432_vm1, %v421_v13 }
  0x18   : > { %1309 = vmatpush3.bf16.xpose.msra.mxu0 %v529_v14  ;;  %1315 = vmatpush3.bf16.xpose.msra.mxu1 %v575_v15 }
  0x19   : > { %1310 = vmatprep.mubr.msk.bf16.mxu0 %vm1406_vm0, %v1405_v0  ;;  %1316 = vmatprep.mubr.msk.bf16.mxu1 %vm1406_vm0, %v1405_v0 }
  0x1a   : > { %1320 = vmatprep.subr.bf16.mxu0 %v1405_v0  ;;  %1326 = vmatprep.subr.bf16.mxu1 %v1405_v0 }
  0x1f   : > { %1311 = vmatmul.mubr.msk.bf16.vlgmr.msra.gmra.mxu0 %vm432_vm1, %v422_v16  ;;  %1317 = vmatmul.mubr.msk.bf16.vlgmr.msra.gmra.mxu1 %vm432_vm1, %v423_v17  ;;  %v428_v17 = vld [vmem:[%s403_s16] sm:$0xf] }
  0x20   : > { %1322 = vmatprep.mubr.msk.bf16.mxu0 %vm1406_vm0, %v1405_v0  ;;  %1328 = vmatprep.mubr.msk.bf16.mxu1 %vm1406_vm0, %v1405_v0 }
  0x8a   : > { %v648_v18 = vpop.permute.xlu0 %647  ;;  %v656_v21 = vpop.permute.xlu1 %655 }
  0x8b   : > { %v662_v22 = vmul.f32 %v648_v18, %v625_v19  ;;  %v664_v40 = vmul.f32 %v656_v21, %v625_v19  ;;  %v429_v18 = vld [vmem:[%s403_s16 + $0x4] sm:$0xf] }
  0x8e   : > { %v652_v20 = vpop.permute.xlu0 %651  ;;  %v660_v33 = vpop.permute.xlu1 %659 }
  0x8f   : > { %v663_v23 = vmul.f32 %v652_v20, %v625_v19  ;;  %v665_v43 = vmul.f32 %v660_v33, %v625_v19  ;;  %v734_v19 = vsel %vm732_vm2, %v428_v17, 0  ;;  %v780_v20 = vsel %vm732_vm2, %v429_v18, 0 }
  0x90   : > { %1321 = vmatpush3.bf16.msra.mxu0 %v734_v19  ;;  %1327 = vmatpush3.bf16.msra.mxu1 %v780_v20 }
  0x91   : > { %1332 = vmatprep.subr.bf16.mxu0 %v1405_v0  ;;  %1338 = vmatprep.subr.bf16.mxu1 %v1405_v0 }
  0xd7   : > { %v473_v24 = vpop.f32.mrf.mxu0  ;;  %v519_v25 = vpop.f32.mrf.mxu1 }
  0xd8   : > { %v617_v26 = vmul.f32 0.35355338, %v473_v24  ;;  %v618_v27 = vmul.f32 0.35355338, %v519_v25 }
  0xd9   : > { %v1300_v28 = vpop.f32.mrf.mxu0  ;;  %v1306_v29 = vpop.f32.mrf.mxu1 }
  0xda   : > { %v666_v31 = vadd.f32 %v662_v22, %v617_v26  ;;  %v667_v32 = vadd.f32 %v663_v23, %v618_v27  ;;  %v431_v26 = vld [vmem:[%s403_s16 + $0xc] sm:$0xf]  ;;  %v430_v29 = vld [vmem:[%s403_s16 + $0x8] sm:$0xf] }
  0xdb   : > { %v476_v34 = vpop.f32.mrf.mxu0  ;;  %v522_v35 = vpop.f32.mrf.mxu1 }
  0xdc   : > { %v678_v36 = vadd.f32 %v1257_v30, %v667_v32  ;;  %v677_v37 = vadd.f32 %v1257_v30, %v666_v31  ;;  %v872_v32 = vsel %vm732_vm2, %v431_v26, 0  ;;  %v826_v34 = vsel %vm732_vm2, %v430_v29, 0  ;;  %v1122_v26 = vld [vmem:[%s414_s27] sm:$0xff] }
  0xdd   : > { %v1301_v38 = vpop.f32.mrf.mxu0  ;;  %v1307_v39 = vpop.f32.mrf.mxu1 }
  0xde   : > { %v684_v41 = vsel %vm432_vm1, %v678_v36, -inf  ;;  %v681_v42 = vsel %vm432_vm1, %v677_v37, -inf }
  0xdf   : > { %685 = vmax.xlane.f32.xlu1 %v684_v41  ;;  %v611_v44 = vpop.f32.mrf.mxu1  ;;  %682 = vmax.xlane.f32.xlu0 %v681_v42  ;;  %v565_v45 = vpop.f32.mrf.mxu0 }
  0xe0   : > { %v620_v46 = vmul.f32 0.35355338, %v611_v44  ;;  %v619_v47 = vmul.f32 0.35355338, %v565_v45  ;;  %v921_v45 = vld [vmem:[%s1611_s6 + $0xc] sm:$0xf] }
  0xe1   : > { %v1312_v48 = vpop.f32.mrf.mxu0  ;;  %v1318_v49 = vpop.f32.mrf.mxu1 }
  0xe2   : > { %v668_v50 = vadd.f32 %v664_v40, %v619_v47  ;;  %v669_v51 = vadd.f32 %v665_v43, %v620_v46  ;;  %v919_v43 = vld [vmem:[%s1611_s6 + $0x4] sm:$0xf]  ;;  %v920_v46 = vld [vmem:[%s1611_s6 + $0x8] sm:$0xf] }
  0xe3   : > { %v568_v52 = vpop.f32.mrf.mxu0  ;;  %v614_v53 = vpop.f32.mrf.mxu1  ;;  %v972_v44 = vsel %vm732_vm2, %v919_v43, 0 }
  0xe4   : > { %v679_v54 = vadd.f32 %v1257_v30, %v668_v50  ;;  %v680_v58 = vadd.f32 %v1257_v30, %v669_v51  ;;  %v1064_v50 = vsel %vm732_vm2, %v921_v45, 0  ;;  %v1018_v53 = vsel %vm732_vm2, %v920_v46, 0 }
  0xe5   : > { %v1313_v55 = vpop.f32.mrf.mxu0  ;;  %v1319_v56 = vpop.f32.mrf.mxu1 }
  0xe6   : > { %v687_v57 = vsel %vm432_vm1, %v679_v54, -inf  ;;  %v690_v59 = vsel %vm432_vm1, %v680_v58, -inf }
  0xe7   : > { %688 = vmax.xlane.f32.xlu0 %v687_v57 }
  0xeb   : > { %691 = vmax.xlane.f32.xlu0 %v690_v59 }
 0x168   : > { %v686_v60 = vpop.xlane.xlu1 %685  ;;  %v683_v61 = vpop.xlane.xlu0 %682 }
 0x169   : > { %v694_v62 = vsub.f32 %v678_v36, %v686_v60  ;;  %v693_v63 = vsub.f32 %v677_v37, %v683_v61  ;;  %v918_v37 = vld [vmem:[%s1611_s6] sm:$0xf] }
 0x16a   : > { %v926_v40 = vsel %vm732_vm2, %v918_v37, 0 }
 0x16b   : > { %v699_v1 = vmul.f32 1.442695, %v694_v62  ;;  %v697_v2 = vmul.f32 1.442695, %v693_v63 }
 0x16d   : > { %1381 = vpow2.f32 %v699_v1 }
 0x16e   : > { %1383 = vpow2.f32 %v697_v2 }
 0x170   : > { %v689_v3 = vpop.xlane.xlu0 %688 }
 0x171   : > { %v695_v4 = vsub.f32 %v679_v54, %v689_v3 }
 0x173   : > { %v701_v5 = vmul.f32 1.442695, %v695_v4 }
 0x174   : > { %v692_v6 = vpop.xlane.xlu0 %691 }
 0x175   : > { %1385 = vpow2.f32 %v701_v5  ;;  %v696_v7 = vsub.f32 %v680_v58, %v692_v6 }
 0x177   : > { %v703_v8 = vmul.f32 1.442695, %v696_v7 }
 0x179   : > { %1387 = vpow2.f32 %v703_v8 }
 0x17a   : > { %v1382_v9 = vpop.eup %1381 }
 0x17b   : > { %v1384_v10 = vpop.eup %1383  ;;  %v708_v11 = vsel %vm432_vm1, %v1382_v9, 0.0 }
 0x17c   : > { %v705_v12 = vsel %vm432_vm1, %v1384_v10, 0.0  ;;  %709 = vadd.xlane.f32.xlu0 %v708_v11 }
 0x17d   : > { %706 = vadd.xlane.f32.xlu1 %v705_v12 }
 0x182   : > { %v1386_v13 = vpop.eup %1385 }
 0x183   : > { %v711_v14 = vsel %vm432_vm1, %v1386_v13, 0.0 }
 0x184   : > { %712 = vadd.xlane.f32.xlu1 %v711_v14 }
 0x186   : > { %v1388_v15 = vpop.eup %1387 }
 0x187   : > { %v714_v16 = vsel %vm432_vm1, %v1388_v15, 0.0 }
 0x188   : > { %715 = vadd.xlane.f32.xlu0 %v714_v16 }
 0x205   : > { %v710_v21 = vpop.xlane.xlu0 %709 }
 0x206   : > { %v707_v22 = vpop.xlane.xlu1 %706  ;;  %1389 = vrcp.f32 %v710_v21 }
 0x207   : > { %1391 = vrcp.f32 %v707_v22 }
 0x20d   : > { %v713_v23 = vpop.xlane.xlu1 %712 }
 0x20e   : > { %1393 = vrcp.f32 %v713_v23  ;;  %v1266_v23 = vld [vmem:[%s1612_s7] ss:$0 sm:$0xff] }
 0x211   : > { %v716_v24 = vpop.xlane.xlu0 %715 }
 0x212   : > { %1395 = vrcp.f32 %v716_v24 }
 0x213   : > { %v1390_v25 = vpop.eup %1389 }
 0x214   : > { %v1392_v27 = vpop.eup %1391  ;;  %v722_v28 = vmul.f32 %v1390_v25, %v1382_v9 }
 0x215   : > { %v721_v30 = vmul.f32 %v1392_v27, %v1384_v10 }
 0x216   : > { %v726_v31 = vpack.c.bf16 %v722_v28, %v722_v28 }
 0x217   : > { %v725_v33 = vpack.c.bf16 %v721_v30, %v721_v30 }
 0x218   : > { %1329 = vmatmul.mubr.msk.bf16.vlgmr.msra.gmra.mxu1 %vm432_vm1, %v726_v31 }
 0x219   : > { %1323 = vmatmul.mubr.msk.bf16.vlgmr.msra.gmra.mxu0 %vm432_vm1, %v725_v33  ;;  %1339 = vmatpush3.bf16.msra.mxu1 %v872_v32 }
 0x21a   : > { %1333 = vmatpush3.bf16.msra.mxu0 %v826_v34  ;;  %1334 = vmatprep.mubr.msk.bf16.mxu0 %vm1406_vm0, %v1405_v0 }
 0x21b   : > { %v1394_v35 = vpop.eup %1393  ;;  %1340 = vmatprep.mubr.msk.bf16.mxu1 %vm1406_vm0, %v1405_v0  ;;  %1344 = vmatprep.subr.bf16.mxu0 %v1405_v0 }
 0x21c   : > { %v723_v36 = vmul.f32 %v1394_v35, %v1386_v13  ;;  %1350 = vmatprep.subr.bf16.mxu1 %v1405_v0 }
 0x21e   : > { %v727_v38 = vpack.c.bf16 %v723_v36, %v723_v36 }
 0x21f   : > { %v1396_v39 = vpop.eup %1395 }
 0x220   : > { %v724_v41 = vmul.f32 %v1396_v39, %v1388_v15 }
 0x221   : > { %1335 = vmatmul.mubr.msk.bf16.vlgmr.msra.gmra.mxu0 %vm432_vm1, %v727_v38 }
 0x222   : > { %v728_v42 = vpack.c.bf16 %v724_v41, %v724_v41  ;;  %1345 = vmatpush3.bf16.msra.mxu0 %v926_v40  ;;  %1346 = vmatprep.mubr.msk.bf16.mxu0 %vm1406_vm0, %v1405_v0 }
 0x223   : > { %1356 = vmatprep.subr.bf16.mxu0 %v1405_v0 }
 0x224   : > { %1341 = vmatmul.mubr.msk.bf16.vlgmr.msra.gmra.mxu1 %vm432_vm1, %v728_v42 }
 0x225   : > { %1352 = vmatprep.mubr.msk.bf16.mxu1 %vm1406_vm0, %v1405_v0  ;;  %1351 = vmatpush3.bf16.msra.mxu1 %v972_v44 }
 0x226   : > { %1362 = vmatprep.subr.bf16.mxu1 %v1405_v0 }
 0x2d8   : > { %v816_v47 = vpop.f32.mrf.mxu1 }
 0x2d9   : > { %v770_v48 = vpop.f32.mrf.mxu0  ;;  %v915_v49 = vpack.c.bf16 %v816_v47, %v816_v47 }
 0x2da   : > { %v914_v51 = vpack.c.bf16 %v770_v48, %v770_v48  ;;  %v1330_v52 = vpop.f32.mrf.mxu1 }
 0x2db   : > { %v1324_v54 = vpop.f32.mrf.mxu0  ;;  %1353 = vmatmul.mubr.msk.bf16.vlgmr.msra.gmra.mxu1 %vm432_vm1, %v915_v49 }
 0x2dc   : > { %1347 = vmatmul.mubr.msk.bf16.vlgmr.msra.gmra.mxu0 %vm432_vm1, %v914_v51  ;;  %v819_v55 = vpop.f32.mrf.mxu1  ;;  %1363 = vmatpush3.bf16.msra.mxu1 %v1064_v50 }
 0x2dd   : > { %v773_v56 = vpop.f32.mrf.mxu0  ;;  %1357 = vmatpush3.bf16.msra.mxu0 %v1018_v53  ;;  %1358 = vmatprep.mubr.msk.bf16.mxu0 %vm1406_vm0, %v1405_v0 }
 0x2de   : > { %v1331_v57 = vpop.f32.mrf.mxu1  ;;  %1364 = vmatprep.mubr.msk.bf16.mxu1 %vm1406_vm0, %v1405_v0 }
 0x2df   : > { %v1325_v58 = vpop.f32.mrf.mxu0 }
 0x2e1   : > { %v862_v59 = vpop.f32.mrf.mxu0 }
 0x2e2   : > { %v916_v60 = vpack.c.bf16 %v862_v59, %v862_v59 }
 0x2e3   : > { %v1336_v61 = vpop.f32.mrf.mxu0 }
 0x2e4   : > { %1359 = vmatmul.mubr.msk.bf16.vlgmr.msra.gmra.mxu0 %vm432_vm1, %v916_v60  ;;  %v908_v62 = vpop.f32.mrf.mxu1 }
 0x2e5   : > { %v865_v63 = vpop.f32.mrf.mxu0  ;;  %v917_v1 = vpack.c.bf16 %v908_v62, %v908_v62 }
 0x2e6   : > { %v1342_v2 = vpop.f32.mrf.mxu1 }
 0x2e7   : > { %v1337_v3 = vpop.f32.mrf.mxu0  ;;  %1365 = vmatmul.mubr.msk.bf16.vlgmr.msra.gmra.mxu1 %vm432_vm1, %v917_v1 }
 0x2e8   : > { %v911_v4 = vpop.f32.mrf.mxu1 }
 0x2ea   : > { %v1343_v5 = vpop.f32.mrf.mxu1 }
 0x39b   : > { %v1008_v6 = vpop.f32.mrf.mxu1 }
 0x39c   : > { %v962_v7 = vpop.f32.mrf.mxu0  ;;  %v1108_v13 = vsel %vm1106_vm3, %v1008_v6, 0.0 }
 0x39d   : > { %v1354_v8 = vpop.f32.mrf.mxu1  ;;  %v1107_v12 = vsel %vm1106_vm3, %v962_v7, 0.0 }
 0x39e   : > { %v1348_v0 = vpop.f32.mrf.mxu0  ;;  %v1109_v16 = vadd.f32 %v1108_v13, %v1107_v12 }
 0x39f   : > { %v1011_v9 = vpop.f32.mrf.mxu1 }
 0x3a0   : > { %v965_v10 = vpop.f32.mrf.mxu0 }
 0x3a1   : > { %v1355_v11 = vpop.f32.mrf.mxu1 }
 0x3a2   : > { %v1349_v14 = vpop.f32.mrf.mxu0 }
 0x3a4   : > { %v1054_v15 = vpop.f32.mrf.mxu0 }
 0x3a5   : > { %v1110_v17 = vsel %vm1106_vm3, %v1054_v15, 0.0 }
 0x3a6   : > { %v1360_v18 = vpop.f32.mrf.mxu0  ;;  %v1111_v19 = vadd.f32 %v1110_v17, %v1109_v16 }
 0x3a7   : > { %v1100_v20 = vpop.f32.mrf.mxu1 }
 0x3a8   : > { %v1057_v21 = vpop.f32.mrf.mxu0  ;;  %v1112_v22 = vsel %vm1106_vm3, %v1100_v20, 0.0 }
 0x3a9   : > { %v1113_v24 = vadd.f32 %v1112_v22, %v1111_v19  ;;  %v1366_v25 = vpop.f32.mrf.mxu1 }
 0x3aa   : > { %v1361_v27 = vpop.f32.mrf.mxu0 }
 0x3ab   : > { %v1121_v28 = vadd.f32 %v1266_v23, %v1113_v24  ;;  %v1103_v29 = vpop.f32.mrf.mxu1 }
 0x3ad   : > { %v1123_v30 = vadd.f32 %v1122_v26, %v1121_v28  ;;  %v1367_v31 = vpop.f32.mrf.mxu1 }
 0x3af   : > { %1124 = vst.msk [vmem:[%s418_s13] sm:$0xff] %vm1106_vm3, %v1123_v30 }
 0x3b0 PF: > { %s19_s30 = sadd.s32 1, %s1403_s30  }
 0x3b1   : > { %p16_p4 = scmp.ge.s32.totalorder %s19_s30, 4  }
 0x3b3   :  { %18 = sbr.rel (!%p16_p4) target bundleno = 1 (0x1), region = 101 }

// kernel: multi_relation_transformer_3d.15
= control target key start
LH: loop header
LB: loop body
LE: loop exit
PB: predicated region body
PF: predicated region fallthrough
CT: control target
= control target key end

     0   :  { %vm22_vm0 = vcmask 261120   ;;  %vm160_vm1 = vcmask 15360   ;;  %s300_s0 = inlined_call_operand.vmem [shape: f32[16,32], index: 0, kind: input, shape index: {}]   ;;  %s301_s3 = inlined_call_operand.vmem [shape: f32[32,2], index: 3, kind: input, shape index: {}]   ;;  %s302_s1 = inlined_call_operand.vmem [shape: f32[1,32], index: 1, kind: input, shape index: {}]   ;;  %s303_s2 = inlined_call_operand.vmem [shape: f32[1,32], index: 2, kind: input, shape index: {}]   ;;  %s304_s4 = inlined_call_operand.vmem [shape: f32[1,2], index: 4, kind: input, shape index: {}]   ;;  %s305_s5 = inlined_call_operand.vmem [shape: f32[16,2], index: 5, kind: output, shape index: {}]  }
   0x1   :  { %v20_v0 = vld [vmem:[%s300_s0] sm:$0xff]  ;;  %v21_v1 = vld [vmem:[%s300_s0 + $0x8] sm:$0xff]  ;;  %v71_v14 = vld [vmem:[%s301_s3 + $0x18] sm:$0xff] }
   0x2   :  { %v23_v2 = vsel %vm22_vm0, %v20_v0, 0.0  ;;  %v26_v3 = vsel %vm22_vm0, %v21_v1, 0.0  ;;  %v70_v15 = vld [vmem:[%s301_s3 + $0x10] sm:$0xff]  ;;  %202 = vmatprep.subr.mxu0 %v71_v14  ;;  %v69_v16 = vld [vmem:[%s301_s3 + $0x8] sm:$0xff]  ;;  %v68_v17 = vld [vmem:[%s301_s3] sm:$0xff] }
   0x3   :  { %24 = vadd.xlane.f32.xlu0 %v23_v2  ;;  %203 = vmatpush3.msra.mxu0 %v71_v14  ;;  %v191_v25 = vld [vmem:[%s302_s1] ss:$0 sm:$0xff] }
   0x4   :  { %204 = vmatprep.subr.mxu0 %v70_v15  ;;  %v192_v27 = vld [vmem:[%s303_s2] ss:$0 sm:$0xff] }
   0x5   :  { %205 = vmatpush3.msra.mxu0 %v70_v15  ;;  %v193_v34 = vld [vmem:[%s304_s4] ss:$0 sm:$0xff] }
   0x6   :  { %206 = vmatprep.subr.mxu0 %v69_v16 }
   0x7   :  { %27 = vadd.xlane.f32.xlu0 %v26_v3  ;;  %207 = vmatpush3.msra.mxu0 %v69_v16 }
   0x8   :  { %208 = vmatprep.subr.mxu0 %v68_v17 }
   0x9   :  { %209 = vmatpush3.msra.mxu0 %v68_v17 }
  0x8c   :  { %v25_v4 = vpop.xlane.xlu0 %24 }
  0x8d   :  { %v30_v5 = vmul.f32 0.03125, %v25_v4 }
  0x8f   :  { %v32_v6 = vsub.f32 %v20_v0, %v30_v5 }
  0x90   :  { %v28_v7 = vpop.xlane.xlu0 %27 }
  0x91   :  { %v31_v8 = vmul.f32 0.03125, %v28_v7  ;;  %v34_v9 = vmul.f32 %v32_v6, %v32_v6 }
  0x93   :  { %v33_v10 = vsub.f32 %v21_v1, %v31_v8  ;;  %v36_v11 = vsel %vm22_vm0, %v34_v9, 0.0 }
  0x94   :  { %37 = vadd.xlane.f32.xlu1 %v36_v11 }
  0x95   :  { %v35_v12 = vmul.f32 %v33_v10, %v33_v10 }
  0x97   :  { %v39_v13 = vsel %vm22_vm0, %v35_v12, 0.0 }
  0x98   :  { %40 = vadd.xlane.f32.xlu1 %v39_v13 }
 0x11d   :  { %v38_v18 = vpop.xlane.xlu1 %37 }
 0x11e   :  { %v42_v19 = vmul.f32 0.03125, %v38_v18 }
 0x120   :  { %v44_v20 = vadd.f32 1e-05, %v42_v19 }
 0x121   :  { %v41_v21 = vpop.xlane.xlu1 %40 }
 0x122   :  { %213 = vrsqrt.f32 %v44_v20  ;;  %v43_v22 = vmul.f32 0.03125, %v41_v21 }
 0x124   :  { %v45_v23 = vadd.f32 1e-05, %v43_v22 }
 0x126   :  { %215 = vrsqrt.f32 %v45_v23 }
 0x12f   :  { %v214_v24 = vpop.eup %213 }
 0x130   :  { %v48_v26 = vmul.f32 %v214_v24, %v32_v6 }
 0x132   :  { %v57_v28 = vmul.f32 %v191_v25, %v48_v26 }
 0x133   :  { %v216_v29 = vpop.eup %215 }
 0x134   :  { %v49_v30 = vmul.f32 %v216_v29, %v33_v10  ;;  %v66_v31 = vadd.f32 %v192_v27, %v57_v28 }
 0x136   :  { %v58_v32 = vmul.f32 %v191_v25, %v49_v30  ;;  %210 = vmatprep.mubr.msk.f32.mxu0 %vm22_vm0, %v66_v31 }
 0x138   :  { %v67_v33 = vadd.f32 %v192_v27, %v58_v32 }
 0x13a   :  { %211 = vmatmul.mubr.msk.f32.vlgmr.msra.gmra.mxu0 %vm22_vm0, %v67_v33 }
 0x1fa   :  { %v212_v35 = vpop.f32.mrf.mxu0 }
 0x1fb   :  { %v157_v36 = vadd.f32 %v212_v35, %v193_v34 }
 0x1fc   :  { %v151_v37 = vpop.f32.mrf.mxu0 }
 0x1fd   :  { %v152_v38 = vadd.f32 %v193_v34, %v151_v37  ;;  %v164_v39 = vsel %vm160_vm1, %v157_v36, -inf }
 0x1fe   :  { %165 = vmax.xlane.f32.xlu1 %v164_v39 }
 0x1ff   :  { %v161_v40 = vsel %vm160_vm1, %v152_v38, -inf }
 0x200   :  { %162 = vmax.xlane.f32.xlu0 %v161_v40 }
 0x287   :  { %v166_v41 = vpop.xlane.xlu1 %165 }
 0x288   :  { %v168_v42 = vsub.f32 %v157_v36, %v166_v41 }
 0x289   :  { %v163_v43 = vpop.xlane.xlu0 %162 }
 0x28a   :  { %v171_v44 = vmul.f32 1.442695, %v168_v42  ;;  %v167_v45 = vsub.f32 %v152_v38, %v163_v43 }
 0x28c   :  { %217 = vpow2.f32 %v171_v44  ;;  %v169_v46 = vmul.f32 1.442695, %v167_v45 }
 0x28e   :  { %219 = vpow2.f32 %v169_v46 }
 0x299   :  { %v218_v47 = vpop.eup %217 }
 0x29a   :  { %v176_v48 = vsel %vm160_vm1, %v218_v47, 0.0 }
 0x29b   :  { %v220_v49 = vpop.eup %219  ;;  %177 = vadd.xlane.f32.xlu1 %v176_v48 }
 0x29c   :  { %v173_v50 = vsel %vm160_vm1, %v220_v49, 0.0 }
 0x29d   :  { %174 = vadd.xlane.f32.xlu0 %v173_v50 }
 0x324   :  { %v178_v51 = vpop.xlane.xlu1 %177 }
 0x325   :  { %221 = vlog2.f32 %v178_v51 }
 0x326   :  { %v175_v52 = vpop.xlane.xlu0 %174 }
 0x327   :  { %223 = vlog2.f32 %v175_v52 }
 0x332   :  { %v222_v53 = vpop.eup %221 }
 0x333   :  { %v182_v54 = vmul.f32 0.6931472, %v222_v53 }
 0x334   :  { %v224_v55 = vpop.eup %223 }
 0x335   :  { %v184_v56 = vsub.f32 %v168_v42, %v182_v54  ;;  %v180_v57 = vmul.f32 0.6931472, %v224_v55 }
 0x337   :  { %186 = vst.msk [vmem:[%s305_s5 + $0x8] sm:$0xff] %vm160_vm1, %v184_v56  ;;  %v183_v58 = vsub.f32 %v167_v45, %v180_v57 }
 0x339   :  { %185 = vst.msk [vmem:[%s305_s5] sm:$0xff] %vm160_vm1, %v183_v58 }

</bundles_post_ra>
